<compile_context>
chip_gen: v7x
topology: tpu7x:2x2x1
jax: 0.10.0
libtpu: 0.0.40
codegen_flags: <defaults>
</compile_context>

<pallas_src>
import functools

import jax
import jax.numpy as jnp
from jax.experimental import pallas as pl
from jax.experimental.pallas import tpu as pltpu

INPUT_SIZE = 4 * 16 * 16   # flattened feature dim (C*H*W)
HIDDEN1 = 512
HIDDEN2 = 256
NUM_CLASSES = 10
OUT_PAD = 128              # lane-dense padded logits width


def _round_up(x, m):
    return (x + m - 1) // m * m


def _mlp_kernel(x_ref, w1_ref, b1_ref, w2_ref, b2_ref, w3_ref, b3_ref, o_ref):
    # Cast the f32 input tile to bf16 on-chip (VPU) -> bf16 x bf16 MXU matmul
    # with f32 accumulation; bias-add + ReLU stay in f32 post-accumulation.
    x = x_ref[...].astype(jnp.bfloat16)
    # fc1 + ReLU
    h1 = jnp.dot(x, w1_ref[...], preferred_element_type=jnp.float32)
    h1 = jnp.maximum(h1 + b1_ref[...], 0.0).astype(jnp.bfloat16)
    # fc2 + ReLU
    h2 = jnp.dot(h1, w2_ref[...], preferred_element_type=jnp.float32)
    h2 = jnp.maximum(h2 + b2_ref[...], 0.0).astype(jnp.bfloat16)
    # fc3 (logits, padded to 128 lanes, no activation)
    out = jnp.dot(h2, w3_ref[...], preferred_element_type=jnp.float32) + b3_ref[...]
    o_ref[...] = out.astype(o_ref.dtype)


def _pick_batch_tile(batch, block_b):
    """Tile is a multiple of 16, capped at block_b, and ~ceil(B/2) so that the
    'parallel' batch grid has >=2 steps whenever B is large enough (v7x)."""
    half = _round_up(max(1, -(-batch // 2)), 16)
    return max(16, min(block_b, half))


@functools.partial(jax.jit, static_argnames=("num_classes", "block_b"))
def mlp_forward(x_nchw, params, num_classes=NUM_CLASSES, block_b=512):
    """x_nchw: (B, C, H, W) float32.  Returns (B, num_classes) float32."""
    w1, b1, w2, b2, w3p, b3p = params
    B = x_nchw.shape[0]
    in_features = w1.shape[0]

    # Same semantics as torch x.view(B, -1); stays f32 (cast happens in-kernel).
    x2d = x_nchw.reshape(B, -1)
    assert x2d.shape[1] == in_features

    tb = _pick_batch_tile(B, block_b)
    grid = (pl.cdiv(B, tb),)          # ragged edge tile handled by masking

    out_pad = w3p.shape[1]

    # Weight / bias blocks are the full arrays; their index_map always returns
    # block (0, 0) -> they stay VMEM-resident across batch tiles.
    resident = lambda shape: pl.BlockSpec(shape, lambda i: (0, 0))

    in_specs = [
        pl.BlockSpec((tb, in_features), lambda i: (i, 0)),       # x tile (f32)
        resident(w1.shape), resident(b1.shape),
        resident(w2.shape), resident(b2.shape),
        resident(w3p.shape), resident(b3p.shape),
    ]
    out_specs = pl.BlockSpec((tb, out_pad), lambda i: (i, 0))
    out_shape = jax.ShapeDtypeStruct((B, out_pad), jnp.float32)

    flops = 2 * B * (in_features * HIDDEN1 + HIDDEN1 * HIDDEN2
                     + HIDDEN2 * out_pad)
    bytes_accessed = (
        x2d.size * 4                                    # f32 input
        + (w1.size + w2.size + w3p.size) * 2            # bf16 weights
        + (b1.size + b2.size + b3p.size) * 4            # f32 biases
        + B * out_pad * 4                               # f32 output
    )

    out_padded = pl.pallas_call(
        _mlp_kernel,
        out_shape=out_shape,
        grid=grid,
        in_specs=in_specs,
        out_specs=out_specs,
        compiler_params=pltpu.CompilerParams(
            dimension_semantics=("parallel",),
        ),
        cost_estimate=pl.CostEstimate(
            flops=flops, transcendentals=0, bytes_accessed=bytes_accessed),
    )(x2d, w1, b1, w2, b2, w3p, b3p)

    return out_padded[:, :num_classes]


def init_params(key, input_size=INPUT_SIZE, num_classes=NUM_CLASSES):
    """Deterministic synthetic init (PyTorch-Linear-style uniform bounds).

    Weights are stored bf16 (halves the dominant weight DMA); biases stay f32
    because the bias-add happens post-accumulation in f32.  fc3 weight/bias are
    zero-padded to OUT_PAD lanes so the kernel's final store is lane-dense.
    """
    ks = jax.random.split(key, 6)

    def linear(kw, kb, fan_in, fan_out):
        bound = 1.0 / jnp.sqrt(fan_in)
        w = jax.random.uniform(kw, (fan_in, fan_out), jnp.float32, -bound, bound)
        b = jax.random.uniform(kb, (1, fan_out), jnp.float32, -bound, bound)
        return w, b

    w1, b1 = linear(ks[0], ks[1], input_size, HIDDEN1)
    w2, b2 = linear(ks[2], ks[3], HIDDEN1, HIDDEN2)
    w3, b3 = linear(ks[4], ks[5], HIDDEN2, num_classes)

    # Pad fc3 to a full 128-lane output; padded columns are exactly zero and
    # are sliced off in the wrapper, so semantics are unchanged.
    w3p = jnp.zeros((HIDDEN2, OUT_PAD), jnp.float32).at[:, :num_classes].set(w3)
    b3p = jnp.zeros((1, OUT_PAD), jnp.float32).at[:, :num_classes].set(b3)

    return (
        w1.astype(jnp.bfloat16), b1,
        w2.astype(jnp.bfloat16), b2,
        w3p.astype(jnp.bfloat16), b3p,
    )


if __name__ == "__main__":
    key = jax.random.PRNGKey(0)
    k_x, k_p = jax.random.split(key)

    # batch=2, channels=4, spatial=16x16  ->  input_size = 1024
    x = jax.random.normal(k_x, (2, 4, 16, 16), dtype=jnp.float32)
    params = init_params(k_p)

    out = mlp_forward(x, params)
    out = jax.block_until_ready(out)

    # Sanity check against a plain-JAX reference using the SAME bf16 params
    # (f32 accumulation), matching the kernel's numerics.
    w1, b1, w2, b2, w3p, b3p = params
    x2d = x.reshape(x.shape[0], -1).astype(jnp.bfloat16)
    ref = jnp.dot(x2d, w1, preferred_element_type=jnp.float32)
    ref = jnp.maximum(ref + b1, 0.0).astype(jnp.bfloat16)
    ref = jnp.dot(ref, w2, preferred_element_type=jnp.float32)
    ref = jnp.maximum(ref + b2, 0.0).astype(jnp.bfloat16)
    ref = jnp.dot(ref, w3p, preferred_element_type=jnp.float32) + b3p
    ref = ref[:, :NUM_CLASSES]

    assert out.shape == (2, NUM_CLASSES)
    assert jnp.allclose(out, ref, atol=2e-2, rtol=2e-2)

    print("KERNEL_OK")
</pallas_src>

<mosaic_0001>
module attributes {stable_mosaic.version = 11 : i64} {
  func.func @_mlp_kernel(%arg0: i32, %arg1: memref<16x1024xf32, #tpu.memory_space<vmem>>, %arg2: memref<1024x512xbf16, #tpu.memory_space<vmem>>, %arg3: memref<1x512xf32, #tpu.memory_space<vmem>>, %arg4: memref<512x256xbf16, #tpu.memory_space<vmem>>, %arg5: memref<1x256xf32, #tpu.memory_space<vmem>>, %arg6: memref<256x128xbf16, #tpu.memory_space<vmem>>, %arg7: memref<1x128xf32, #tpu.memory_space<vmem>>, %arg8: memref<16x128xf32, #tpu.memory_space<vmem>>) attributes {dimension_semantics = [#tpu.dimension_semantics<parallel>], iteration_bounds = array<i64: 1>, scalar_prefetch = 0 : i64, scratch_operands = 0 : i64, tpu.core_type = #tpu.core_type<tc>, window_params = [{transform_indices = @transform_0, window_bounds = array<i64: 16, 1024>}, {pipeline_mode = #tpu.pipeline_mode<synchronous>, transform_indices = @transform_1, window_bounds = array<i64: 1024, 512>}, {pipeline_mode = #tpu.pipeline_mode<synchronous>, transform_indices = @transform_2, window_bounds = array<i64: 1, 512>}, {pipeline_mode = #tpu.pipeline_mode<synchronous>, transform_indices = @transform_3, window_bounds = array<i64: 512, 256>}, {pipeline_mode = #tpu.pipeline_mode<synchronous>, transform_indices = @transform_4, window_bounds = array<i64: 1, 256>}, {pipeline_mode = #tpu.pipeline_mode<synchronous>, transform_indices = @transform_5, window_bounds = array<i64: 256, 128>}, {pipeline_mode = #tpu.pipeline_mode<synchronous>, transform_indices = @transform_6, window_bounds = array<i64: 1, 128>}, {transform_indices = @transform_7, window_bounds = array<i64: 16, 128>}]} {
    %c0 = arith.constant 0 : index
    %c0_0 = arith.constant 0 : index
    %0 = vector.load %arg1[%c0, %c0_0] : memref<16x1024xf32, #tpu.memory_space<vmem>>, vector<16x1024xf32>
    %1 = arith.truncf %0 : vector<16x1024xf32> to vector<16x1024xbf16>
    %c0_1 = arith.constant 0 : index
    %c0_2 = arith.constant 0 : index
    %2 = vector.load %arg2[%c0_1, %c0_2] : memref<1024x512xbf16, #tpu.memory_space<vmem>>, vector<1024x512xbf16>
    %cst = arith.constant dense<0.000000e+00> : vector<16x512xf32>
    %3 = tpu.matmul %1, %2, %cst {dimension_numbers = #tpu.dot_dimension_numbers<[1], [0], [0], [1], [0, 0, 1, 1], [], []>} : vector<16x1024xbf16>, vector<1024x512xbf16>, vector<16x512xf32> -> vector<16x512xf32>
    %c0_3 = arith.constant 0 : index
    %c0_4 = arith.constant 0 : index
    %4 = vector.load %arg3[%c0_3, %c0_4] : memref<1x512xf32, #tpu.memory_space<vmem>>, vector<1x512xf32>
    %5 = vector.broadcast %4 : vector<1x512xf32> to vector<16x512xf32>
    %6 = arith.addf %3, %5 : vector<16x512xf32>
    %cst_5 = arith.constant 0.000000e+00 : f32
    %7 = vector.broadcast %cst_5 : f32 to vector<16x512xf32>
    %8 = arith.maximumf %6, %7 : vector<16x512xf32>
    %9 = arith.truncf %8 : vector<16x512xf32> to vector<16x512xbf16>
    %c0_6 = arith.constant 0 : index
    %c0_7 = arith.constant 0 : index
    %10 = vector.load %arg4[%c0_6, %c0_7] : memref<512x256xbf16, #tpu.memory_space<vmem>>, vector<512x256xbf16>
    %cst_8 = arith.constant dense<0.000000e+00> : vector<16x256xf32>
    %11 = tpu.matmul %9, %10, %cst_8 {dimension_numbers = #tpu.dot_dimension_numbers<[1], [0], [0], [1], [0, 0, 1, 1], [], []>} : vector<16x512xbf16>, vector<512x256xbf16>, vector<16x256xf32> -> vector<16x256xf32>
    %c0_9 = arith.constant 0 : index
    %c0_10 = arith.constant 0 : index
    %12 = vector.load %arg5[%c0_9, %c0_10] : memref<1x256xf32, #tpu.memory_space<vmem>>, vector<1x256xf32>
    %13 = vector.broadcast %12 : vector<1x256xf32> to vector<16x256xf32>
    %14 = arith.addf %11, %13 : vector<16x256xf32>
    %cst_11 = arith.constant 0.000000e+00 : f32
    %15 = vector.broadcast %cst_11 : f32 to vector<16x256xf32>
    %16 = arith.maximumf %14, %15 : vector<16x256xf32>
    %17 = arith.truncf %16 : vector<16x256xf32> to vector<16x256xbf16>
    %c0_12 = arith.constant 0 : index
    %c0_13 = arith.constant 0 : index
    %18 = vector.load %arg6[%c0_12, %c0_13] : memref<256x128xbf16, #tpu.memory_space<vmem>>, vector<256x128xbf16>
    %cst_14 = arith.constant dense<0.000000e+00> : vector<16x128xf32>
    %19 = tpu.matmul %17, %18, %cst_14 {dimension_numbers = #tpu.dot_dimension_numbers<[1], [0], [0], [1], [0, 0, 1, 1], [], []>} : vector<16x256xbf16>, vector<256x128xbf16>, vector<16x128xf32> -> vector<16x128xf32>
    %c0_15 = arith.constant 0 : index
    %c0_16 = arith.constant 0 : index
    %20 = vector.load %arg7[%c0_15, %c0_16] : memref<1x128xf32, #tpu.memory_space<vmem>>, vector<1x128xf32>
    %21 = vector.broadcast %20 : vector<1x128xf32> to vector<16x128xf32>
    %22 = arith.addf %19, %21 : vector<16x128xf32>
    %c0_17 = arith.constant 0 : index
    %c0_18 = arith.constant 0 : index
    %23 = vector.load %arg8[%c0_17, %c0_18] : memref<16x128xf32, #tpu.memory_space<vmem>>, vector<16x128xf32>
    tpu.vector_store %arg8[%c0_17, %c0_18], %22 {strides = array<i32>} : memref<16x128xf32, #tpu.memory_space<vmem>>, vector<16x128xf32>,
    return
  }
  func.func @transform_0(%arg0: i32) -> (i32, i32) {
    %c0_i32 = arith.constant 0 : i32
    %c0_i32_0 = arith.constant 0 : i32
    return %arg0, %c0_i32 : i32, i32
  }
  func.func @transform_1(%arg0: i32) -> (i32, i32) {
    %c0_i32 = arith.constant 0 : i32
    %c0_i32_0 = arith.constant 0 : i32
    %c0_i32_1 = arith.constant 0 : i32
    return %c0_i32, %c0_i32_0 : i32, i32
  }
  func.func @transform_2(%arg0: i32) -> (i32, i32) {
    %c0_i32 = arith.constant 0 : i32
    %c0_i32_0 = arith.constant 0 : i32
    %c0_i32_1 = arith.constant 0 : i32
    return %c0_i32, %c0_i32_0 : i32, i32
  }
  func.func @transform_3(%arg0: i32) -> (i32, i32) {
    %c0_i32 = arith.constant 0 : i32
    %c0_i32_0 = arith.constant 0 : i32
    %c0_i32_1 = arith.constant 0 : i32
    return %c0_i32, %c0_i32_0 : i32, i32
  }
  func.func @transform_4(%arg0: i32) -> (i32, i32) {
    %c0_i32 = arith.constant 0 : i32
    %c0_i32_0 = arith.constant 0 : i32
    %c0_i32_1 = arith.constant 0 : i32
    return %c0_i32, %c0_i32_0 : i32, i32
  }
  func.func @transform_5(%arg0: i32) -> (i32, i32) {
    %c0_i32 = arith.constant 0 : i32
    %c0_i32_0 = arith.constant 0 : i32
    %c0_i32_1 = arith.constant 0 : i32
    return %c0_i32, %c0_i32_0 : i32, i32
  }
  func.func @transform_6(%arg0: i32) -> (i32, i32) {
    %c0_i32 = arith.constant 0 : i32
    %c0_i32_0 = arith.constant 0 : i32
    %c0_i32_1 = arith.constant 0 : i32
    return %c0_i32, %c0_i32_0 : i32, i32
  }
  func.func @transform_7(%arg0: i32) -> (i32, i32) {
    %c0_i32 = arith.constant 0 : i32
    %c0_i32_0 = arith.constant 0 : i32
    return %arg0, %c0_i32 : i32, i32
  }
}

</mosaic_0001>

<bundles_post_ra>
// kernel: mlp_forward.1
= control target key start
LH: loop header
LB: loop body
LE: loop exit
PB: predicated region body
PF: predicated region fallthrough
CT: control target
= control target key end

     0   :  { %12 = vsyncpa [#allocation3], 0  ;;  %s4145_s0 = inlined_call_operand.vmem [shape: f32[2,1024], index: 0, kind: input, shape index: {}]   ;;  %s4146_s1 = inlined_call_operand.hbm [shape: bf16[1024,512], index: 1, kind: input, shape index: {}]   ;;  %s4147_s2 = inlined_call_operand.vmem [shape: f32[1,512], index: 2, kind: input, shape index: {}]   ;;  %s4148_s3 = inlined_call_operand.hbm [shape: bf16[512,256], index: 3, kind: input, shape index: {}]   ;;  %s4149_s4 = inlined_call_operand.vmem [shape: f32[1,256], index: 4, kind: input, shape index: {}]   ;;  %s4150_s5 = inlined_call_operand.vmem [shape: bf16[256,128], index: 5, kind: input, shape index: {}]   ;;  %s4151_s6 = inlined_call_operand.vmem [shape: f32[1,128], index: 6, kind: input, shape index: {}]   ;;  %s4152_s7 = inlined_call_operand.hbm [shape: f32[2,128], index: 7, kind: output, shape index: {}]  }
   0x1   :  { %13 = vsyncpa [#allocation6], 0 }
   0x2   :  { %14 = vsyncpa [#allocation4], 0  ;;  %s3855_s24 = smov [#allocation2]   ;;  %s3783_s28 = scalar_lea.hbm %s4146_s1, 32768 }
   0x3   :  { %s22_s25 = sshll.u32 %s3855_s24, 4  ;;  %p3784_p0 = scmp.ne.s32.totalorder %s4146_s1, %s3783_s28  ;;  %s23_s25 = int_to_ptr.vmem [resolvable:$true] %s22_s25 }
   0x4   :  { %p3787_p1 = scmp.lt.u32.totalorder %s3783_s28, %s4146_s1 }
   0x6   :  { %p3789_p2 = pnand %p3787_p1, %p3784_p0 }
   0x8   :  { %3792 = shalt.err (!%p3789_p2)
}
   0x9   :  { %s3793_s10 = scalar_lea.vmem %s23_s25, 32768  ;;  %p3798_p4 = scmp.lt.s32.totalorder %s23_s25, %s23_s25 }
   0xa   :  { %p3794_p3 = scmp.ne.s32.totalorder %s23_s25, %s3793_s10  ;;  %p3799_p5 = scmp.lt.s32.totalorder %s3793_s10, %s3793_s10 }
   0xc   :  { %p3800_p6 = por %p3799_p5, %p3798_p4 }
   0xe   :  { %p3801_p7 = pnand %p3800_p6, %p3794_p3 }
  0x10   :  { %3804 = shalt.err (!%p3801_p7)
}
  0x11   :  { %s3856_s11 = smov 256   ;;  %s3857_s12 = smov 16  }
  0x12   :  { %28 = dma.hbm_to_vmem [thread:$0]  %s4146_s1, 32768, %s23_s25, [#allocation3], %s3856_s11, %s3856_s11, %s3857_s12  }
  0x13   :  { %s3858_s15 = smov [#allocation5]   ;;  %s3805_s19 = scalar_lea.hbm %s4148_s3, 8192 }
  0x14   :  { %s36_s16 = sshll.u32 %s3858_s15, 4  ;;  %p3806_p8 = scmp.ne.s32.totalorder %s4148_s3, %s3805_s19  ;;  %s37_s16 = int_to_ptr.vmem [resolvable:$true] %s36_s16 }
  0x15   :  { %p3809_p9 = scmp.lt.u32.totalorder %s3805_s19, %s4148_s3 }
  0x17   :  { %p3811_p10 = pnand %p3809_p9, %p3806_p8 }
  0x19   :  { %3814 = shalt.err (!%p3811_p10)
}
  0x1a   :  { %s3815_s24 = scalar_lea.vmem %s37_s16, 8192  ;;  %p3820_p12 = scmp.lt.s32.totalorder %s37_s16, %s37_s16 }
  0x1b   :  { %p3816_p11 = scmp.ne.s32.totalorder %s37_s16, %s3815_s24  ;;  %p3821_p13 = scmp.lt.s32.totalorder %s3815_s24, %s3815_s24 }
  0x1d   :  { %p3822_p0 = por %p3821_p13, %p3820_p12 }
  0x1f   :  { %p3823_p1 = pnand %p3822_p0, %p3816_p11 }
  0x21   :  { %3826 = shalt.err (!%p3823_p1)
}
  0x22   :  { %s3859_s1 = smov 128   ;;  %s3860_s25 = smov 8  }
  0x23   :  { %42 = dma.hbm_to_vmem [thread:$0]  %s4148_s3, 8192, %s37_s16, [#allocation6], %s3859_s1, %s3859_s1, %s3860_s25  }
  0x24   :  { %3849 = dma.done.wait [#allocation3], 32768  }
  0x25   :  { %3850 = vsyncadd [#allocation3], 4294934528 }
  0x26   :  { %3851 = dma.done.wait [#allocation6], 8192  }
  0x27   :  { %3852 = vsyncadd [#allocation6], 4294959104  ;;  %v3263_v0 = vld [vmem:[#allocation2 + $0x4] ss:$16 sps:$4 sm:$0xff]   ;;  %v3267_v2 = vld [vmem:[#allocation2] ss:$16 sps:$4 sm:$0xff]   ;;  %v95_v41 = vlaneseq }
  0x28   :  { %v3265_v1 = vld [vmem:[#allocation2 + $0x204] ss:$16 sps:$4 sm:$0xff]   ;;  %1814 = vmatprep.subr.bf16.mxu1 %v3263_v0  ;;  %v3268_v3 = vld [vmem:[#allocation2 + $0x200] ss:$16 sps:$4 sm:$0xff]   ;;  %v3861_v39 = vmov 1983009808  }
  0x29   :  { %1857 = vmatprep.subr.bf16.mxu0 %v3265_v1  ;;  %v3269_v4 = vld [vmem:[#allocation2 + $0x24] ss:$16 sps:$4 sm:$0xff]   ;;  %1815 = vmatpush1.bf16.msra.mxu1 %v3267_v2  ;;  %v3273_v6 = vld [vmem:[#allocation2 + $0x20] ss:$16 sps:$4 sm:$0xff]   ;;  %v93_v40 = vunpack.c.l.s4 %v3861_v39  ;;  %v3929_v48 = vshrl.u32 %v95_v41, 7 }
  0x2a   :  { %1858 = vmatpush1.bf16.msra.mxu0 %v3268_v3  ;;  %v3271_v5 = vld [vmem:[#allocation2 + $0x224] ss:$16 sps:$4 sm:$0xff]   ;;  %1816 = vmatprep.subr.bf16.mxu1 %v3269_v4  ;;  %v3274_v7 = vld [vmem:[#allocation2 + $0x220] ss:$16 sps:$4 sm:$0xff]   ;;  %v3382_v39 = vld [vmem:[#allocation2 + $0x2c] ss:$16 sps:$4 sm:$0xff]  }
  0x2b   :  { %1859 = vmatprep.subr.bf16.mxu0 %v3271_v5  ;;  %v3275_v8 = vld [vmem:[#allocation2 + $0x44] ss:$16 sps:$4 sm:$0xff]   ;;  %v3279_v10 = vld [vmem:[#allocation2 + $0x40] ss:$16 sps:$4 sm:$0xff]   ;;  %v94_v47 = vunpack.c.0.s8 %v93_v40  ;;  %v3380_v41 = vld [vmem:[#allocation2 + $0x28] ss:$16 sps:$4 sm:$0xff]  }
  0x2c   :  { %v3277_v9 = vld [vmem:[#allocation2 + $0x244] ss:$16 sps:$4 sm:$0xff]   ;;  %v3280_v11 = vld [vmem:[#allocation2 + $0x240] ss:$16 sps:$4 sm:$0xff]  }
  0x2d   :  { %1817 = vmatpush1.bf16.msra.mxu1 %v3273_v6  ;;  %v3281_v12 = vld [vmem:[#allocation2 + $0x64] ss:$16 sps:$4 sm:$0xff]   ;;  %v3285_v14 = vld [vmem:[#allocation2 + $0x60] ss:$16 sps:$4 sm:$0xff]   ;;  %v3932_v55 = vsub.s32 %v94_v47, %v3929_v48  ;;  %v3394_v47 = vld [vmem:[#allocation2 + $0x6c] ss:$16 sps:$4 sm:$0xff]  }
  0x2e   :  { %1860 = vmatpush1.bf16.msra.mxu0 %v3274_v7  ;;  %1818 = vmatprep.subr.bf16.mxu1 %v3275_v8  ;;  %v3283_v13 = vld [vmem:[#allocation2 + $0x264] ss:$16 sps:$4 sm:$0xff]   ;;  %v3286_v15 = vld [vmem:[#allocation2 + $0x260] ss:$16 sps:$4 sm:$0xff]  }
  0x2f   :  { %1861 = vmatprep.subr.bf16.mxu0 %v3277_v9  ;;  %v3287_v16 = vld [vmem:[#allocation2 + $0x84] ss:$16 sps:$4 sm:$0xff]   ;;  %v3291_v18 = vld [vmem:[#allocation2 + $0x80] ss:$16 sps:$4 sm:$0xff]  }
  0x30   :  { %v3289_v17 = vld [vmem:[#allocation2 + $0x284] ss:$16 sps:$4 sm:$0xff]   ;;  %v3292_v19 = vld [vmem:[#allocation2 + $0x280] ss:$16 sps:$4 sm:$0xff]  }
  0x31   :  { %1819 = vmatpush1.bf16.msra.mxu1 %v3279_v10  ;;  %v3293_v20 = vld [vmem:[#allocation2 + $0xa4] ss:$16 sps:$4 sm:$0xff]   ;;  %v3297_v22 = vld [vmem:[#allocation2 + $0xa0] ss:$16 sps:$4 sm:$0xff]  }
  0x32   :  { %1862 = vmatpush1.bf16.msra.mxu0 %v3280_v11  ;;  %1820 = vmatprep.subr.bf16.mxu1 %v3281_v12  ;;  %v3295_v21 = vld [vmem:[#allocation2 + $0x2a4] ss:$16 sps:$4 sm:$0xff]   ;;  %v3298_v23 = vld [vmem:[#allocation2 + $0x2a0] ss:$16 sps:$4 sm:$0xff]  }
  0x33   :  { %1863 = vmatprep.subr.bf16.mxu0 %v3283_v13  ;;  %v3299_v24 = vld [vmem:[#allocation2 + $0xc4] ss:$16 sps:$4 sm:$0xff]   ;;  %v3303_v26 = vld [vmem:[#allocation2 + $0xc0] ss:$16 sps:$4 sm:$0xff]  }
  0x34   :  { %v3301_v25 = vld [vmem:[#allocation2 + $0x2c4] ss:$16 sps:$4 sm:$0xff]   ;;  %v3304_v27 = vld [vmem:[#allocation2 + $0x2c0] ss:$16 sps:$4 sm:$0xff]  }
  0x35   :  { %1821 = vmatpush1.bf16.msra.mxu1 %v3285_v14  ;;  %v3305_v28 = vld [vmem:[#allocation2 + $0xe4] ss:$16 sps:$4 sm:$0xff]   ;;  %v3309_v30 = vld [vmem:[#allocation2 + $0xe0] ss:$16 sps:$4 sm:$0xff]  }
  0x36   :  { %1864 = vmatpush1.bf16.msra.mxu0 %v3286_v15  ;;  %1822 = vmatprep.subr.bf16.mxu1 %v3287_v16  ;;  %v3307_v29 = vld [vmem:[#allocation2 + $0x2e4] ss:$16 sps:$4 sm:$0xff]   ;;  %v3310_v31 = vld [vmem:[#allocation2 + $0x2e0] ss:$16 sps:$4 sm:$0xff]  }
  0x37   :  { %1865 = vmatprep.subr.bf16.mxu0 %v3289_v17  ;;  %v3311_v32 = vld [vmem:[#allocation2 + $0x104] ss:$16 sps:$4 sm:$0xff]   ;;  %v3315_v34 = vld [vmem:[#allocation2 + $0x100] ss:$16 sps:$4 sm:$0xff]  }
  0x38   :  { %v3313_v33 = vld [vmem:[#allocation2 + $0x304] ss:$16 sps:$4 sm:$0xff]   ;;  %v3316_v35 = vld [vmem:[#allocation2 + $0x300] ss:$16 sps:$4 sm:$0xff]  }
  0x39   :  { %1823 = vmatpush1.bf16.msra.mxu1 %v3291_v18  ;;  %v3317_v36 = vld [vmem:[#allocation2 + $0x124] ss:$16 sps:$4 sm:$0xff]   ;;  %v3321_v38 = vld [vmem:[#allocation2 + $0x120] ss:$16 sps:$4 sm:$0xff]  }
  0x3a   :  { %1866 = vmatpush1.bf16.msra.mxu0 %v3292_v19  ;;  %1824 = vmatprep.subr.bf16.mxu1 %v3293_v20  ;;  %v3319_v37 = vld [vmem:[#allocation2 + $0x324] ss:$16 sps:$4 sm:$0xff]   ;;  %v3322_v42 = vld [vmem:[#allocation2 + $0x320] ss:$16 sps:$4 sm:$0xff]  }
  0x3b   :  { %1867 = vmatprep.subr.bf16.mxu0 %v3295_v21  ;;  %v3323_v43 = vld [vmem:[#allocation2 + $0x144] ss:$16 sps:$4 sm:$0xff]   ;;  %v3327_v45 = vld [vmem:[#allocation2 + $0x140] ss:$16 sps:$4 sm:$0xff]  }
  0x3c   :  { %v3325_v44 = vld [vmem:[#allocation2 + $0x344] ss:$16 sps:$4 sm:$0xff]   ;;  %v3328_v46 = vld [vmem:[#allocation2 + $0x340] ss:$16 sps:$4 sm:$0xff]  }
  0x3d   :  { %1825 = vmatpush1.bf16.msra.mxu1 %v3297_v22  ;;  %v3329_v49 = vld [vmem:[#allocation2 + $0x164] ss:$16 sps:$4 sm:$0xff]   ;;  %v3333_v51 = vld [vmem:[#allocation2 + $0x160] ss:$16 sps:$4 sm:$0xff]  }
  0x3e   :  { %1868 = vmatpush1.bf16.msra.mxu0 %v3298_v23  ;;  %1826 = vmatprep.subr.bf16.mxu1 %v3299_v24  ;;  %v3331_v50 = vld [vmem:[#allocation2 + $0x364] ss:$16 sps:$4 sm:$0xff]   ;;  %v3334_v52 = vld [vmem:[#allocation2 + $0x360] ss:$16 sps:$4 sm:$0xff]  }
  0x3f   :  { %1869 = vmatprep.subr.bf16.mxu0 %v3301_v25  ;;  %v3335_v53 = vld [vmem:[#allocation2 + $0x184] ss:$16 sps:$4 sm:$0xff]   ;;  %v3359_v56 = vld [vmem:[%s4145_s0] ss:$16 sps:$4 sm:$0xff]  }
  0x40   :  { %v3337_v54 = vld [vmem:[#allocation2 + $0x384] ss:$16 sps:$4 sm:$0xff]   ;;  %v3361_v57 = vld [vmem:[%s4145_s0 + $0x20] ss:$16 sps:$4 sm:$0xff]   ;;  %v98_v63 = vrot.slane %v3359_v56, %v3932_v55 }
  0x41   :  { %1827 = vmatpush1.bf16.msra.mxu1 %v3303_v26  ;;  %v3339_v58 = vld [vmem:[#allocation2 + $0x180] ss:$16 sps:$4 sm:$0xff]   ;;  %v3367_v62 = vld [vmem:[%s4145_s0 + $0x4] ss:$16 sps:$4 sm:$0xff]   ;;  %v112_v0 = vrot.slane %v3361_v57, %v3932_v55  ;;  %v3406_v57 = vld [vmem:[#allocation2 + $0xac] ss:$16 sps:$4 sm:$0xff]  }
  0x42   :  { %1870 = vmatpush1.bf16.msra.mxu0 %v3304_v27  ;;  %1828 = vmatprep.subr.bf16.mxu1 %v3305_v28  ;;  %v3340_v59 = vld [vmem:[#allocation2 + $0x380] ss:$16 sps:$4 sm:$0xff]   ;;  %v3368_v1 = vld [vmem:[%s4145_s0 + $0x24] ss:$16 sps:$4 sm:$0xff]   ;;  %v105_v7 = vrot.slane %v3367_v62, %v3932_v55 }
  0x43   :  { %1871 = vmatprep.subr.bf16.mxu0 %v3307_v29  ;;  %v3363_v60 = vld [vmem:[%s4145_s0 + $0x40] ss:$16 sps:$4 sm:$0xff]   ;;  %v3369_v2 = vld [vmem:[%s4145_s0 + $0x44] ss:$16 sps:$4 sm:$0xff]   ;;  %v121_v9 = vcombine.high %v98_v63, %v112_v0  ;;  %v119_v10 = vrot.slane %v3368_v1, %v3932_v55  ;;  %v120_v28 = vcombine.low %v98_v63, %v112_v0  ;;  %v3410_v63 = vld [vmem:[#allocation2 + $0xc8] ss:$16 sps:$4 sm:$0xff]  }
  0x44   :  { %v3365_v61 = vld [vmem:[%s4145_s0 + $0x60] ss:$16 sps:$4 sm:$0xff]   ;;  %v3370_v3 = vld [vmem:[%s4145_s0 + $0x64] ss:$16 sps:$4 sm:$0xff]   ;;  %v170_v5 = vrot.slane %v3363_v60, %v3932_v55  ;;  %v177_v12 = vrot.slane %v3369_v2, %v3932_v55  ;;  %v3418_v1 = vld [vmem:[#allocation2 + $0xec] ss:$16 sps:$4 sm:$0xff]  }
  0x45   :  { %1829 = vmatpush1.bf16.msra.mxu1 %v3309_v30  ;;  %v3341_v4 = vld [vmem:[#allocation2 + $0x1a4] ss:$16 sps:$4 sm:$0xff]   ;;  %v184_v6 = vrot.slane %v3365_v61, %v3932_v55  ;;  %v191_v13 = vrot.slane %v3370_v3, %v3932_v55  ;;  %v3345_v14 = vld [vmem:[#allocation2 + $0x1a0] ss:$16 sps:$4 sm:$0xff]   ;;  %v123_v16 = vcombine.high %v105_v7, %v119_v10  ;;  %v122_v30 = vcombine.low %v105_v7, %v119_v10  ;;  %v3412_v61 = vld [vmem:[#allocation2 + $0xcc] ss:$16 sps:$4 sm:$0xff]  }
  0x46   :  { %1872 = vmatpush1.bf16.msra.mxu0 %v3310_v31  ;;  %1830 = vmatprep.subr.bf16.mxu1 %v3311_v32  ;;  %v3343_v8 = vld [vmem:[#allocation2 + $0x3a4] ss:$16 sps:$4 sm:$0xff]   ;;  %v3346_v15 = vld [vmem:[#allocation2 + $0x3a0] ss:$16 sps:$4 sm:$0xff]   ;;  %v3416_v3 = vld [vmem:[#allocation2 + $0xe8] ss:$16 sps:$4 sm:$0xff]  }
  0x47   :  { %1873 = vmatprep.subr.bf16.mxu0 %v3313_v33  ;;  %v193_v11 = vcombine.high %v170_v5, %v184_v6  ;;  %v3347_v17 = vld [vmem:[#allocation2 + $0x1c4] ss:$16 sps:$4 sm:$0xff]   ;;  %v195_v19 = vcombine.high %v177_v12, %v191_v13  ;;  %v3351_v22 = vld [vmem:[#allocation2 + $0x1c0] ss:$16 sps:$4 sm:$0xff]   ;;  %v192_v29 = vcombine.low %v170_v5, %v184_v6  ;;  %v194_v31 = vcombine.low %v177_v12, %v191_v13  ;;  %v3376_v33 = vld [vmem:[#allocation2 + $0xc] ss:$16 sps:$4 sm:$0xff]  }
  0x48   :  { %v3349_v20 = vld [vmem:[#allocation2 + $0x3c4] ss:$16 sps:$4 sm:$0xff]   ;;  %v3352_v23 = vld [vmem:[#allocation2 + $0x3c0] ss:$16 sps:$4 sm:$0xff]   ;;  %v3424_v5 = vld [vmem:[#allocation2 + $0x10c] ss:$16 sps:$4 sm:$0xff]  }
  0x49   :  { %1831 = vmatpush1.bf16.msra.mxu1 %v3315_v34  ;;  %v249_v18 = vpack.c.bf16 %v193_v11, %v121_v9  ;;  %v3966_v21 = vpack.c.bf16 %v195_v19, %v123_v16  ;;  %v3353_v24 = vld [vmem:[#allocation2 + $0x1e4] ss:$16 sps:$4 sm:$0xff]   ;;  %v3357_v26 = vld [vmem:[#allocation2 + $0x1e0] ss:$16 sps:$4 sm:$0xff]   ;;  %v3969_v34 = vpack.c.bf16 %v192_v29, %v120_v28  ;;  %v3467_v6 = vld [vmem:[%s4145_s0 + $0x8] ss:$16 sps:$4 sm:$0xff]  }
  0x4a   :  { %1874 = vmatpush1.bf16.msra.mxu0 %v3316_v35  ;;  %1832 = vmatprep.subr.bf16.mxu1 %v3317_v36  ;;  %v3355_v25 = vld [vmem:[#allocation2 + $0x3e4] ss:$16 sps:$4 sm:$0xff]   ;;  %v3358_v27 = vld [vmem:[#allocation2 + $0x3e0] ss:$16 sps:$4 sm:$0xff]   ;;  %v3374_v36 = vld [vmem:[#allocation2 + $0x8] ss:$16 sps:$4 sm:$0xff]   ;;  %v3988_v12 = vrot.slane %v3467_v6, %v3932_v55 }
  0x4b   :  { %1875 = vmatprep.subr.bf16.mxu0 %v3319_v37  ;;  %1846 = vmatprep.mubr.bf16.mxu1 %v249_v18  ;;  %v3373_v32 = vld [vmem:[#allocation2 + $0x404] ss:$16 sps:$4 sm:$0xff]   ;;  %v3371_v35 = vld [vmem:[#allocation2 + $0x400] ss:$16 sps:$4 sm:$0xff]   ;;  %v3971_v37 = vpack.c.bf16 %v194_v31, %v122_v30  ;;  %v3469_v7 = vld [vmem:[%s4145_s0 + $0x28] ss:$16 sps:$4 sm:$0xff]  }
  0x4c   :  { %1889 = vmatprep.mubr.bf16.mxu0 %v3966_v21  ;;  %v3377_v40 = vld [vmem:[#allocation2 + $0x420] ss:$16 sps:$4 sm:$0xff]   ;;  %v3403_v56 = vld [vmem:[#allocation2 + $0x4a4] ss:$16 sps:$4 sm:$0xff]   ;;  %v3473_v9 = vld [vmem:[%s4145_s0 + $0x68] ss:$16 sps:$4 sm:$0xff]   ;;  %v3991_v13 = vrot.slane %v3469_v7, %v3932_v55 }
  0x4d   :  { %1833 = vmatpush1.bf16.msra.mxu1 %v3321_v38  ;;  %v3379_v38 = vld [vmem:[#allocation2 + $0x424] ss:$16 sps:$4 sm:$0xff]   ;;  %v3407_v62 = vld [vmem:[#allocation2 + $0x4c0] ss:$16 sps:$4 sm:$0xff]   ;;  %v3422_v11 = vld [vmem:[#allocation2 + $0x108] ss:$16 sps:$4 sm:$0xff]   ;;  %v3997_v16 = vrot.slane %v3473_v9, %v3932_v55 }
  0x4e   :  { %1876 = vmatpush1.bf16.msra.mxu0 %v3322_v42  ;;  %1834 = vmatprep.subr.bf16.mxu1 %v3323_v43  ;;  %v3385_v42 = vld [vmem:[#allocation2 + $0x444] ss:$16 sps:$4 sm:$0xff]   ;;  %v3388_v43 = vld [vmem:[#allocation2 + $0x4c] ss:$16 sps:$4 sm:$0xff]   ;;  %v3413_v2 = vld [vmem:[#allocation2 + $0x4e0] ss:$16 sps:$4 sm:$0xff]  }
  0x4f   :  { %1877 = vmatprep.subr.bf16.mxu0 %v3325_v44  ;;  %v3383_v44 = vld [vmem:[#allocation2 + $0x440] ss:$16 sps:$4 sm:$0xff]   ;;  %v3409_v60 = vld [vmem:[#allocation2 + $0x4c4] ss:$16 sps:$4 sm:$0xff]   ;;  %v3442_v29 = vld [vmem:[#allocation2 + $0x16c] ss:$16 sps:$4 sm:$0xff]  }
  0x50   :  { %v3415_v0 = vld [vmem:[#allocation2 + $0x4e4] ss:$16 sps:$4 sm:$0xff]   ;;  %v3419_v10 = vld [vmem:[#allocation2 + $0x500] ss:$16 sps:$4 sm:$0xff]   ;;  %v3440_v31 = vld [vmem:[#allocation2 + $0x168] ss:$16 sps:$4 sm:$0xff]  }
  0x51   :  { %1835 = vmatpush1.bf16.msra.mxu1 %v3327_v45  ;;  %v3386_v45 = vld [vmem:[#allocation2 + $0x48] ss:$16 sps:$4 sm:$0xff]   ;;  %v3439_v28 = vld [vmem:[#allocation2 + $0x564] ss:$16 sps:$4 sm:$0xff]   ;;  %v3437_v30 = vld [vmem:[#allocation2 + $0x560] ss:$16 sps:$4 sm:$0xff]  }
  0x52   :  { %1878 = vmatpush1.bf16.msra.mxu0 %v3328_v46  ;;  %1836 = vmatprep.subr.bf16.mxu1 %v3329_v49  ;;  %v3391_v46 = vld [vmem:[#allocation2 + $0x464] ss:$16 sps:$4 sm:$0xff]   ;;  %v3389_v49 = vld [vmem:[#allocation2 + $0x460] ss:$16 sps:$4 sm:$0xff]   ;;  %v3574_v6 = vld [vmem:[%s4145_s0 + $0x6c] ss:$16 sps:$4 sm:$0xff]  }
  0x53   :  { %1879 = vmatprep.subr.bf16.mxu0 %v3331_v50  ;;  %v3392_v50 = vld [vmem:[#allocation2 + $0x68] ss:$16 sps:$4 sm:$0xff]   ;;  %v3493_v7 = vld [vmem:[#allocation2 + $0x660] ss:$16 sps:$4 sm:$0xff]  }
  0x55   :  { %1837 = vmatpush1.bf16.msra.mxu1 %v3333_v51  ;;  %v3397_v51 = vld [vmem:[#allocation2 + $0x484] ss:$16 sps:$4 sm:$0xff]  }
  0x56   :  { %1880 = vmatpush1.bf16.msra.mxu0 %v3334_v52  ;;  %1838 = vmatprep.subr.bf16.mxu1 %v3335_v53  ;;  %v3400_v52 = vld [vmem:[#allocation2 + $0x8c] ss:$16 sps:$4 sm:$0xff]   ;;  %v3395_v53 = vld [vmem:[#allocation2 + $0x480] ss:$16 sps:$4 sm:$0xff]  }
  0x57   :  { %1881 = vmatprep.subr.bf16.mxu0 %v3337_v54  ;;  %v3398_v54 = vld [vmem:[#allocation2 + $0x88] ss:$16 sps:$4 sm:$0xff]  }
  0x59   :  { %1839 = vmatpush1.bf16.msra.mxu1 %v3339_v58  ;;  %v3401_v58 = vld [vmem:[#allocation2 + $0x4a0] ss:$16 sps:$4 sm:$0xff]  }
  0x5a   :  { %1882 = vmatpush1.bf16.msra.mxu0 %v3340_v59  ;;  %1840 = vmatprep.subr.bf16.mxu1 %v3341_v4  ;;  %v3404_v59 = vld [vmem:[#allocation2 + $0xa8] ss:$16 sps:$4 sm:$0xff]   ;;  %v3421_v4 = vld [vmem:[#allocation2 + $0x504] ss:$16 sps:$4 sm:$0xff]  }
  0x5b   :  { %1883 = vmatprep.subr.bf16.mxu0 %v3343_v8  ;;  %v3471_v8 = vld [vmem:[%s4145_s0 + $0x48] ss:$16 sps:$4 sm:$0xff]  }
  0x5d   :  { %1841 = vmatpush1.bf16.msra.mxu1 %v3345_v14  ;;  %v3427_v14 = vld [vmem:[#allocation2 + $0x524] ss:$16 sps:$4 sm:$0xff]  }
  0x5e   :  { %1884 = vmatpush1.bf16.msra.mxu0 %v3346_v15  ;;  %1842 = vmatprep.subr.bf16.mxu1 %v3347_v17  ;;  %v3994_v15 = vrot.slane %v3471_v8, %v3932_v55  ;;  %v3430_v17 = vld [vmem:[#allocation2 + $0x12c] ss:$16 sps:$4 sm:$0xff]   ;;  %v3496_v8 = vld [vmem:[#allocation2 + $0x268] ss:$16 sps:$4 sm:$0xff]  }
  0x5f   :  { %1885 = vmatprep.subr.bf16.mxu0 %v3349_v20  ;;  %v3425_v20 = vld [vmem:[#allocation2 + $0x520] ss:$16 sps:$4 sm:$0xff]  }
  0x60   :  { %v229_v19 = vcombine.high %v3994_v15, %v3997_v16 }
  0x61   :  { %1843 = vmatpush1.bf16.msra.mxu1 %v3351_v22  ;;  %v3428_v22 = vld [vmem:[#allocation2 + $0x128] ss:$16 sps:$4 sm:$0xff]  }
  0x62   :  { %1886 = vmatpush1.bf16.msra.mxu0 %v3352_v23  ;;  %1844 = vmatprep.subr.bf16.mxu1 %v3353_v24  ;;  %v3433_v23 = vld [vmem:[#allocation2 + $0x544] ss:$16 sps:$4 sm:$0xff]  }
  0x63   :  { %1887 = vmatprep.subr.bf16.mxu0 %v3355_v25  ;;  %v3436_v25 = vld [vmem:[#allocation2 + $0x14c] ss:$16 sps:$4 sm:$0xff]  }
  0x65   :  { %1845 = vmatpush1.bf16.msra.mxu1 %v3357_v26  ;;  %v3431_v26 = vld [vmem:[#allocation2 + $0x540] ss:$16 sps:$4 sm:$0xff]  }
  0x66   :  { %1888 = vmatpush1.bf16.msra.mxu0 %v3358_v27  ;;  %1986 = vmatprep.subr.bf16.mxu1 %v3376_v33  ;;  %v3434_v27 = vld [vmem:[#allocation2 + $0x148] ss:$16 sps:$4 sm:$0xff]   ;;  %v3448_v33 = vld [vmem:[#allocation2 + $0x18c] ss:$16 sps:$4 sm:$0xff]  }
  0x67   :  { %1900 = vmatprep.subr.bf16.mxu0 %v3373_v32  ;;  %v3445_v32 = vld [vmem:[#allocation2 + $0x584] ss:$16 sps:$4 sm:$0xff]  }
  0x68   :  { %1847 = vmatmul.mubr.bf16.vlgmr.msra.gmra.mrb[0].mxu1 %v3969_v34 }
  0x69   :  { %1890 = vmatmul.mubr.bf16.vlgmr.msra.gmra.mrb[0].mxu0 %v3971_v37  ;;  %1987 = vmatpush1.bf16.msra.mxu1 %v3374_v36  ;;  %v3446_v36 = vld [vmem:[#allocation2 + $0x188] ss:$16 sps:$4 sm:$0xff]  }
  0x6a   :  { %1901 = vmatpush1.bf16.msra.mxu0 %v3371_v35  ;;  %1988 = vmatprep.subr.bf16.mxu1 %v3382_v39  ;;  %v3443_v35 = vld [vmem:[#allocation2 + $0x580] ss:$16 sps:$4 sm:$0xff]   ;;  %v3454_v39 = vld [vmem:[#allocation2 + $0x1ac] ss:$16 sps:$4 sm:$0xff]  }
  0x6b   :  { %1902 = vmatprep.subr.bf16.mxu0 %v3379_v38  ;;  %2018 = vmatprep.mubr.bf16.mxu1 %v249_v18  ;;  %v157_v18 = vcombine.high %v3988_v12, %v3991_v13  ;;  %v3451_v38 = vld [vmem:[#allocation2 + $0x5a4] ss:$16 sps:$4 sm:$0xff]  }
  0x6d   :  { %1989 = vmatpush1.bf16.msra.mxu1 %v3380_v41  ;;  %v4003_v24 = vpack.c.bf16 %v229_v19, %v157_v18  ;;  %v3452_v41 = vld [vmem:[#allocation2 + $0x1a8] ss:$16 sps:$4 sm:$0xff]   ;;  %v3507_v19 = vld [vmem:[#allocation2 + $0x6a4] ss:$16 sps:$4 sm:$0xff]  }
  0x6e   :  { %1903 = vmatpush1.bf16.msra.mxu0 %v3377_v40  ;;  %1990 = vmatprep.subr.bf16.mxu1 %v3388_v43  ;;  %v3449_v40 = vld [vmem:[#allocation2 + $0x5a0] ss:$16 sps:$4 sm:$0xff]   ;;  %v3460_v43 = vld [vmem:[#allocation2 + $0x1cc] ss:$16 sps:$4 sm:$0xff]   ;;  %v3502_v18 = vld [vmem:[#allocation2 + $0x288] ss:$16 sps:$4 sm:$0xff]  }
  0x6f   :  { %1904 = vmatprep.subr.bf16.mxu0 %v3385_v42  ;;  %1932 = vmatprep.mubr.bf16.mxu0 %v4003_v24  ;;  %v3457_v42 = vld [vmem:[#allocation2 + $0x5c4] ss:$16 sps:$4 sm:$0xff]  }
  0x71   :  { %1991 = vmatpush1.bf16.msra.mxu1 %v3386_v45  ;;  %v3458_v45 = vld [vmem:[#allocation2 + $0x1c8] ss:$16 sps:$4 sm:$0xff]  }
  0x72   :  { %1905 = vmatpush1.bf16.msra.mxu0 %v3383_v44  ;;  %1992 = vmatprep.subr.bf16.mxu1 %v3394_v47  ;;  %v3455_v44 = vld [vmem:[#allocation2 + $0x5c0] ss:$16 sps:$4 sm:$0xff]   ;;  %v3466_v47 = vld [vmem:[#allocation2 + $0x1ec] ss:$16 sps:$4 sm:$0xff]  }
  0x73   :  { %1906 = vmatprep.subr.bf16.mxu0 %v3391_v46  ;;  %v3463_v46 = vld [vmem:[#allocation2 + $0x5e4] ss:$16 sps:$4 sm:$0xff]  }
  0x75   :  { %1993 = vmatpush1.bf16.msra.mxu1 %v3392_v50  ;;  %v3464_v50 = vld [vmem:[#allocation2 + $0x1e8] ss:$16 sps:$4 sm:$0xff]  }
  0x76   :  { %1907 = vmatpush1.bf16.msra.mxu0 %v3389_v49  ;;  %1994 = vmatprep.subr.bf16.mxu1 %v3400_v52  ;;  %v3461_v49 = vld [vmem:[#allocation2 + $0x5e0] ss:$16 sps:$4 sm:$0xff]   ;;  %v228_v52 = vcombine.low %v3994_v15, %v3997_v16 }
  0x77   :  { %1908 = vmatprep.subr.bf16.mxu0 %v3397_v51  ;;  %v156_v51 = vcombine.low %v3988_v12, %v3991_v13  ;;  %v4037_v13 = vrot.slane %v3574_v6, %v3932_v55  ;;  %v3577_v6 = vld [vmem:[#allocation2 + $0x40c] ss:$16 sps:$4 sm:$0xff]  }
  0x79   :  { %1995 = vmatpush1.bf16.msra.mxu1 %v3398_v54  ;;  %v3480_v54 = vld [vmem:[#allocation2 + $0x20c] ss:$16 sps:$4 sm:$0xff]  }
  0x7a   :  { %1909 = vmatpush1.bf16.msra.mxu0 %v3395_v53  ;;  %1996 = vmatprep.subr.bf16.mxu1 %v3406_v57  ;;  %v3477_v53 = vld [vmem:[#allocation2 + $0x604] ss:$16 sps:$4 sm:$0xff]   ;;  %v3478_v57 = vld [vmem:[#allocation2 + $0x208] ss:$16 sps:$4 sm:$0xff]  }
  0x7b   :  { %1910 = vmatprep.subr.bf16.mxu0 %v3403_v56  ;;  %v3475_v56 = vld [vmem:[#allocation2 + $0x600] ss:$16 sps:$4 sm:$0xff]  }
  0x7d   :  { %1997 = vmatpush1.bf16.msra.mxu1 %v3404_v59  ;;  %v3483_v59 = vld [vmem:[#allocation2 + $0x624] ss:$16 sps:$4 sm:$0xff]  }
  0x7e   :  { %1911 = vmatpush1.bf16.msra.mxu0 %v3401_v58  ;;  %1998 = vmatprep.subr.bf16.mxu1 %v3412_v61  ;;  %v4010_v58 = vpack.c.bf16 %v228_v52, %v156_v51  ;;  %v3481_v61 = vld [vmem:[#allocation2 + $0x620] ss:$16 sps:$4 sm:$0xff]   ;;  %v3544_v51 = vld [vmem:[#allocation2 + $0x368] ss:$16 sps:$4 sm:$0xff]   ;;  %v3549_v52 = vld [vmem:[#allocation2 + $0x784] ss:$16 sps:$4 sm:$0xff]  }
  0x7f   :  { %1912 = vmatprep.subr.bf16.mxu0 %v3409_v60  ;;  %v3486_v60 = vld [vmem:[#allocation2 + $0x22c] ss:$16 sps:$4 sm:$0xff]  }
  0x81   :  { %1999 = vmatpush1.bf16.msra.mxu1 %v3410_v63  ;;  %v3489_v63 = vld [vmem:[#allocation2 + $0x644] ss:$16 sps:$4 sm:$0xff]  }
  0x82   :  { %1913 = vmatpush1.bf16.msra.mxu0 %v3407_v62  ;;  %2000 = vmatprep.subr.bf16.mxu1 %v3418_v1  ;;  %v3484_v62 = vld [vmem:[#allocation2 + $0x228] ss:$16 sps:$4 sm:$0xff]   ;;  %v3487_v1 = vld [vmem:[#allocation2 + $0x640] ss:$16 sps:$4 sm:$0xff]  }
  0x83   :  { %1914 = vmatprep.subr.bf16.mxu0 %v3415_v0  ;;  %v3492_v0 = vld [vmem:[#allocation2 + $0x24c] ss:$16 sps:$4 sm:$0xff]  }
  0x85   :  { %2001 = vmatpush1.bf16.msra.mxu1 %v3416_v3  ;;  %v3495_v3 = vld [vmem:[#allocation2 + $0x664] ss:$16 sps:$4 sm:$0xff]  }
  0x86   :  { %1915 = vmatpush1.bf16.msra.mxu0 %v3413_v2  ;;  %2002 = vmatprep.subr.bf16.mxu1 %v3424_v5  ;;  %v3490_v2 = vld [vmem:[#allocation2 + $0x248] ss:$16 sps:$4 sm:$0xff]   ;;  %v3572_v5 = vld [vmem:[%s4145_s0 + $0x2c] ss:$16 sps:$4 sm:$0xff]  }
  0x87   :  { %1916 = vmatprep.subr.bf16.mxu0 %v3421_v4  ;;  %v3498_v4 = vld [vmem:[#allocation2 + $0x26c] ss:$16 sps:$4 sm:$0xff]  }
  0x89   :  { %2003 = vmatpush1.bf16.msra.mxu1 %v3422_v11  ;;  %v3501_v11 = vld [vmem:[#allocation2 + $0x684] ss:$16 sps:$4 sm:$0xff]  }
  0x8a   :  { %1917 = vmatpush1.bf16.msra.mxu0 %v3419_v10  ;;  %2004 = vmatprep.subr.bf16.mxu1 %v3430_v17  ;;  %v4031_v10 = vrot.slane %v3572_v5, %v3932_v55  ;;  %v3499_v17 = vld [vmem:[#allocation2 + $0x680] ss:$16 sps:$4 sm:$0xff]  }
  0x8b   :  { %1918 = vmatprep.subr.bf16.mxu0 %v3427_v14  ;;  %v3504_v14 = vld [vmem:[#allocation2 + $0x28c] ss:$16 sps:$4 sm:$0xff]  }
  0x8d   :  { %2005 = vmatpush1.bf16.msra.mxu1 %v3428_v22  ;;  %v3505_v22 = vld [vmem:[#allocation2 + $0x6a0] ss:$16 sps:$4 sm:$0xff]  }
  0x8e   :  { %1919 = vmatpush1.bf16.msra.mxu0 %v3425_v20  ;;  %2006 = vmatprep.subr.bf16.mxu1 %v3436_v25  ;;  %v3513_v25 = vld [vmem:[#allocation2 + $0x6c4] ss:$16 sps:$4 sm:$0xff]  }
  0x8f   :  { %1920 = vmatprep.subr.bf16.mxu0 %v3433_v23  ;;  %v3508_v23 = vld [vmem:[#allocation2 + $0x2a8] ss:$16 sps:$4 sm:$0xff]  }
  0x91   :  { %2007 = vmatpush1.bf16.msra.mxu1 %v3434_v27  ;;  %v3511_v27 = vld [vmem:[#allocation2 + $0x6c0] ss:$16 sps:$4 sm:$0xff]  }
  0x92   :  { %1921 = vmatpush1.bf16.msra.mxu0 %v3431_v26  ;;  %2008 = vmatprep.subr.bf16.mxu1 %v3442_v29  ;;  %v3516_v26 = vld [vmem:[#allocation2 + $0x2cc] ss:$16 sps:$4 sm:$0xff]   ;;  %v3519_v29 = vld [vmem:[#allocation2 + $0x6e4] ss:$16 sps:$4 sm:$0xff]  }
  0x93   :  { %1922 = vmatprep.subr.bf16.mxu0 %v3439_v28  ;;  %v3514_v28 = vld [vmem:[#allocation2 + $0x2c8] ss:$16 sps:$4 sm:$0xff]  }
  0x95   :  { %2009 = vmatpush1.bf16.msra.mxu1 %v3440_v31  ;;  %v3517_v31 = vld [vmem:[#allocation2 + $0x6e0] ss:$16 sps:$4 sm:$0xff]  }
  0x96   :  { %1923 = vmatpush1.bf16.msra.mxu0 %v3437_v30  ;;  %2010 = vmatprep.subr.bf16.mxu1 %v3448_v33  ;;  %v3522_v30 = vld [vmem:[#allocation2 + $0x2ec] ss:$16 sps:$4 sm:$0xff]   ;;  %v3525_v33 = vld [vmem:[#allocation2 + $0x704] ss:$16 sps:$4 sm:$0xff]  }
  0x97   :  { %1924 = vmatprep.subr.bf16.mxu0 %v3445_v32  ;;  %v3520_v32 = vld [vmem:[#allocation2 + $0x2e8] ss:$16 sps:$4 sm:$0xff]  }
  0x99   :  { %2011 = vmatpush1.bf16.msra.mxu1 %v3446_v36  ;;  %v3523_v36 = vld [vmem:[#allocation2 + $0x700] ss:$16 sps:$4 sm:$0xff]  }
  0x9a   :  { %1925 = vmatpush1.bf16.msra.mxu0 %v3443_v35  ;;  %2012 = vmatprep.subr.bf16.mxu1 %v3454_v39  ;;  %v3528_v35 = vld [vmem:[#allocation2 + $0x30c] ss:$16 sps:$4 sm:$0xff]   ;;  %v3531_v39 = vld [vmem:[#allocation2 + $0x724] ss:$16 sps:$4 sm:$0xff]  }
  0x9b   :  { %1926 = vmatprep.subr.bf16.mxu0 %v3451_v38  ;;  %v3526_v38 = vld [vmem:[#allocation2 + $0x308] ss:$16 sps:$4 sm:$0xff]  }
  0x9d   :  { %2013 = vmatpush1.bf16.msra.mxu1 %v3452_v41  ;;  %v3529_v41 = vld [vmem:[#allocation2 + $0x720] ss:$16 sps:$4 sm:$0xff]  }
  0x9e   :  { %1927 = vmatpush1.bf16.msra.mxu0 %v3449_v40  ;;  %2014 = vmatprep.subr.bf16.mxu1 %v3460_v43  ;;  %v3534_v40 = vld [vmem:[#allocation2 + $0x32c] ss:$16 sps:$4 sm:$0xff]   ;;  %v3537_v43 = vld [vmem:[#allocation2 + $0x744] ss:$16 sps:$4 sm:$0xff]  }
  0x9f   :  { %1928 = vmatprep.subr.bf16.mxu0 %v3457_v42  ;;  %v3532_v42 = vld [vmem:[#allocation2 + $0x328] ss:$16 sps:$4 sm:$0xff]  }
  0xa1   :  { %2015 = vmatpush1.bf16.msra.mxu1 %v3458_v45  ;;  %v3535_v45 = vld [vmem:[#allocation2 + $0x740] ss:$16 sps:$4 sm:$0xff]  }
  0xa2   :  { %1929 = vmatpush1.bf16.msra.mxu0 %v3455_v44  ;;  %2016 = vmatprep.subr.bf16.mxu1 %v3466_v47  ;;  %v3540_v44 = vld [vmem:[#allocation2 + $0x34c] ss:$16 sps:$4 sm:$0xff]   ;;  %v3543_v47 = vld [vmem:[#allocation2 + $0x764] ss:$16 sps:$4 sm:$0xff]  }
  0xa3   :  { %1930 = vmatprep.subr.bf16.mxu0 %v3463_v46  ;;  %v3538_v46 = vld [vmem:[#allocation2 + $0x348] ss:$16 sps:$4 sm:$0xff]  }
  0xa5   :  { %2017 = vmatpush1.bf16.msra.mxu1 %v3464_v50  ;;  %v3541_v50 = vld [vmem:[#allocation2 + $0x760] ss:$16 sps:$4 sm:$0xff]  }
  0xa6   :  { %1931 = vmatpush1.bf16.msra.mxu0 %v3461_v49  ;;  %2029 = vmatprep.subr.bf16.mxu1 %v3480_v54  ;;  %v3546_v49 = vld [vmem:[#allocation2 + $0x36c] ss:$16 sps:$4 sm:$0xff]   ;;  %v3547_v54 = vld [vmem:[#allocation2 + $0x780] ss:$16 sps:$4 sm:$0xff]  }
  0xa7   :  { %1943 = vmatprep.subr.bf16.mxu0 %v3477_v53  ;;  %v3552_v53 = vld [vmem:[#allocation2 + $0x38c] ss:$16 sps:$4 sm:$0xff]  }
  0xa8   :  { %2019 = vmatmul.mubr.bf16.vlgmr.msra.gmra.mrb[4].mxu1 %v3969_v34  ;;  %v3571_v34 = vld [vmem:[%s4145_s0 + $0xc] ss:$16 sps:$4 sm:$0xff]  }
  0xa9   :  { %1933 = vmatmul.mubr.bf16.vlgmr.msra.gmra.mrb[0].mxu0 %v4010_v58  ;;  %2030 = vmatpush1.bf16.msra.mxu1 %v3478_v57  ;;  %v4028_v9 = vrot.slane %v3571_v34, %v3932_v55  ;;  %v3555_v57 = vld [vmem:[#allocation2 + $0x7a4] ss:$16 sps:$4 sm:$0xff]  }
  0xaa   :  { %1944 = vmatpush1.bf16.msra.mxu0 %v3475_v56  ;;  %2031 = vmatprep.subr.bf16.mxu1 %v3486_v60  ;;  %v3550_v56 = vld [vmem:[#allocation2 + $0x388] ss:$16 sps:$4 sm:$0xff]   ;;  %v3553_v60 = vld [vmem:[#allocation2 + $0x7a0] ss:$16 sps:$4 sm:$0xff]  }
  0xab   :  { %1945 = vmatprep.subr.bf16.mxu0 %v3483_v59  ;;  %2061 = vmatprep.mubr.bf16.mxu1 %v3966_v21  ;;  %v3573_v21 = vld [vmem:[%s4145_s0 + $0x4c] ss:$16 sps:$4 sm:$0xff]   ;;  %v159_v15 = vcombine.high %v4028_v9, %v4031_v10  ;;  %v158_v34 = vcombine.low %v4028_v9, %v4031_v10  ;;  %v3671_v9 = vld [vmem:[#allocation5] ss:$8 sps:$4 sm:$0xff]  }
  0xac   :  { %v4034_v12 = vrot.slane %v3573_v21, %v3932_v55  ;;  %v3510_v55 = vld [vmem:[#allocation2 + $0x2ac] ss:$16 sps:$4 sm:$0xff]   ;;  %v3568_v21 = vld [vmem:[#allocation2 + $0x3e8] ss:$16 sps:$4 sm:$0xff]  }
  0xad   :  { %2032 = vmatpush1.bf16.msra.mxu1 %v3484_v62  ;;  %v3558_v59 = vld [vmem:[#allocation2 + $0x3ac] ss:$16 sps:$4 sm:$0xff]   ;;  %v3561_v62 = vld [vmem:[#allocation2 + $0x7c4] ss:$16 sps:$4 sm:$0xff]  }
  0xae   :  { %1946 = vmatpush1.bf16.msra.mxu0 %v3481_v61  ;;  %2033 = vmatprep.subr.bf16.mxu1 %v3492_v0  ;;  %v231_v16 = vcombine.high %v4034_v12, %v4037_v13  ;;  %v3556_v61 = vld [vmem:[#allocation2 + $0x3a8] ss:$16 sps:$4 sm:$0xff]   ;;  %v3559_v0 = vld [vmem:[#allocation2 + $0x7c0] ss:$16 sps:$4 sm:$0xff]   ;;  %v230_v5 = vcombine.low %v4034_v12, %v4037_v13  ;;  %v3673_v10 = vld [vmem:[#allocation5 + $0x4] ss:$8 sps:$4 sm:$0xff]  }
  0xaf   :  { %1947 = vmatprep.subr.bf16.mxu0 %v3489_v63  ;;  %v3564_v63 = vld [vmem:[#allocation2 + $0x3cc] ss:$16 sps:$4 sm:$0xff]   ;;  %v3578_v12 = vld [vmem:[#allocation2 + $0x428] ss:$16 sps:$4 sm:$0xff]  }
  0xb0   :  { %v4043_v20 = vpack.c.bf16 %v231_v16, %v159_v15  ;;  %v3676_v13 = vld [vmem:[#allocation5 + $0x14] ss:$8 sps:$4 sm:$0xff]   ;;  %v3674_v15 = vld [vmem:[#allocation5 + $0x10] ss:$8 sps:$4 sm:$0xff]   ;;  %v3679_v16 = vld [vmem:[#allocation5 + $0x24] ss:$8 sps:$4 sm:$0xff]  }
  0xb1   :  { %2034 = vmatpush1.bf16.msra.mxu1 %v3490_v2  ;;  %v3567_v2 = vld [vmem:[#allocation2 + $0x7e4] ss:$16 sps:$4 sm:$0xff]  }
  0xb2   :  { %1948 = vmatpush1.bf16.msra.mxu0 %v3487_v1  ;;  %2035 = vmatprep.subr.bf16.mxu1 %v3498_v4  ;;  %v3562_v1 = vld [vmem:[#allocation2 + $0x3c8] ss:$16 sps:$4 sm:$0xff]   ;;  %v3565_v4 = vld [vmem:[#allocation2 + $0x7e0] ss:$16 sps:$4 sm:$0xff]  }
  0xb3   :  { %1949 = vmatprep.subr.bf16.mxu0 %v3495_v3  ;;  %1975 = vmatprep.mubr.bf16.mxu0 %v4043_v20  ;;  %v3570_v3 = vld [vmem:[#allocation2 + $0x3ec] ss:$16 sps:$4 sm:$0xff]  }
  0xb5   :  { %2036 = vmatpush1.bf16.msra.mxu1 %v3496_v8  ;;  %v4050_v8 = vpack.c.bf16 %v230_v5, %v158_v34  ;;  %v3617_v34 = vld [vmem:[#allocation2 + $0x5c8] ss:$16 sps:$4 sm:$0xff]   ;;  %v3622_v5 = vld [vmem:[#allocation2 + $0x5ec] ss:$16 sps:$4 sm:$0xff]  }
  0xb6   :  { %1950 = vmatpush1.bf16.msra.mxu0 %v3493_v7  ;;  %2037 = vmatprep.subr.bf16.mxu1 %v3504_v14  ;;  %v3575_v7 = vld [vmem:[#allocation2 + $0x408] ss:$16 sps:$4 sm:$0xff]   ;;  %v3583_v14 = vld [vmem:[#allocation2 + $0x44c] ss:$16 sps:$4 sm:$0xff]  }
  0xb7   :  { %1951 = vmatprep.subr.bf16.mxu0 %v3501_v11  ;;  %v3580_v11 = vld [vmem:[#allocation2 + $0x42c] ss:$16 sps:$4 sm:$0xff]  }
  0xb9   :  { %2038 = vmatpush1.bf16.msra.mxu1 %v3502_v18  ;;  %v3586_v18 = vld [vmem:[#allocation2 + $0x46c] ss:$16 sps:$4 sm:$0xff]  }
  0xba   :  { %1952 = vmatpush1.bf16.msra.mxu0 %v3499_v17  ;;  %2039 = vmatprep.subr.bf16.mxu1 %v3510_v55  ;;  %v3581_v17 = vld [vmem:[#allocation2 + $0x448] ss:$16 sps:$4 sm:$0xff]   ;;  %v3589_v55 = vld [vmem:[#allocation2 + $0x48c] ss:$16 sps:$4 sm:$0xff]  }
  0xbb   :  { %1953 = vmatprep.subr.bf16.mxu0 %v3507_v19  ;;  %v3584_v19 = vld [vmem:[#allocation2 + $0x468] ss:$16 sps:$4 sm:$0xff]  }
  0xbd   :  { %2040 = vmatpush1.bf16.msra.mxu1 %v3508_v23  ;;  %v3685_v23 = vld [vmem:[#allocation5 + $0x44] ss:$8 sps:$4 sm:$0xff]  }
  0xbe   :  { %1954 = vmatpush1.bf16.msra.mxu0 %v3505_v22  ;;  %2041 = vmatprep.subr.bf16.mxu1 %v3516_v26  ;;  %v3682_v22 = vld [vmem:[#allocation5 + $0x34] ss:$8 sps:$4 sm:$0xff]  }
  0xbf   :  { %1955 = vmatprep.subr.bf16.mxu0 %v3513_v25  ;;  %v3587_v25 = vld [vmem:[#allocation2 + $0x488] ss:$16 sps:$4 sm:$0xff]   ;;  %v3592_v26 = vld [vmem:[#allocation2 + $0x4ac] ss:$16 sps:$4 sm:$0xff]  }
  0xc1   :  { %2042 = vmatpush1.bf16.msra.mxu1 %v3514_v28  ;;  %v3688_v28 = vld [vmem:[#allocation5 + $0x54] ss:$8 sps:$4 sm:$0xff]  }
  0xc2   :  { %1956 = vmatpush1.bf16.msra.mxu0 %v3511_v27  ;;  %2043 = vmatprep.subr.bf16.mxu1 %v3522_v30  ;;  %v3683_v27 = vld [vmem:[#allocation5 + $0x40] ss:$8 sps:$4 sm:$0xff]   ;;  %v3595_v30 = vld [vmem:[#allocation2 + $0x4cc] ss:$16 sps:$4 sm:$0xff]  }
  0xc3   :  { %1957 = vmatprep.subr.bf16.mxu0 %v3519_v29  ;;  %v3590_v29 = vld [vmem:[#allocation2 + $0x4a8] ss:$16 sps:$4 sm:$0xff]  }
  0xc5   :  { %2044 = vmatpush1.bf16.msra.mxu1 %v3520_v32  ;;  %v3691_v32 = vld [vmem:[#allocation5 + $0x64] ss:$8 sps:$4 sm:$0xff]  }
  0xc6   :  { %1958 = vmatpush1.bf16.msra.mxu0 %v3517_v31  ;;  %2045 = vmatprep.subr.bf16.mxu1 %v3528_v35  ;;  %v3686_v31 = vld [vmem:[#allocation5 + $0x50] ss:$8 sps:$4 sm:$0xff]   ;;  %v3598_v35 = vld [vmem:[#allocation2 + $0x4ec] ss:$16 sps:$4 sm:$0xff]  }
  0xc7   :  { %1959 = vmatprep.subr.bf16.mxu0 %v3525_v33  ;;  %v3593_v33 = vld [vmem:[#allocation2 + $0x4c8] ss:$16 sps:$4 sm:$0xff]  }
  0xc9   :  { %2046 = vmatpush1.bf16.msra.mxu1 %v3526_v38  ;;  %v3694_v38 = vld [vmem:[#allocation5 + $0x74] ss:$8 sps:$4 sm:$0xff]  }
  0xca   :  { %1960 = vmatpush1.bf16.msra.mxu0 %v3523_v36  ;;  %2047 = vmatprep.subr.bf16.mxu1 %v3534_v40  ;;  %v3689_v36 = vld [vmem:[#allocation5 + $0x60] ss:$8 sps:$4 sm:$0xff]   ;;  %v3601_v40 = vld [vmem:[#allocation2 + $0x50c] ss:$16 sps:$4 sm:$0xff]  }
  0xcb   :  { %1961 = vmatprep.subr.bf16.mxu0 %v3531_v39  ;;  %v3596_v39 = vld [vmem:[#allocation2 + $0x4e8] ss:$16 sps:$4 sm:$0xff]  }
  0xcd   :  { %2048 = vmatpush1.bf16.msra.mxu1 %v3532_v42  ;;  %v3697_v42 = vld [vmem:[#allocation5 + $0x84] ss:$8 sps:$4 sm:$0xff]  }
  0xce   :  { %1962 = vmatpush1.bf16.msra.mxu0 %v3529_v41  ;;  %2049 = vmatprep.subr.bf16.mxu1 %v3540_v44  ;;  %v3692_v41 = vld [vmem:[#allocation5 + $0x70] ss:$8 sps:$4 sm:$0xff]   ;;  %v3604_v44 = vld [vmem:[#allocation2 + $0x52c] ss:$16 sps:$4 sm:$0xff]  }
  0xcf   :  { %1963 = vmatprep.subr.bf16.mxu0 %v3537_v43  ;;  %v3599_v43 = vld [vmem:[#allocation2 + $0x508] ss:$16 sps:$4 sm:$0xff]  }
  0xd1   :  { %2050 = vmatpush1.bf16.msra.mxu1 %v3538_v46  ;;  %v3700_v46 = vld [vmem:[#allocation5 + $0x94] ss:$8 sps:$4 sm:$0xff]  }
  0xd2   :  { %1964 = vmatpush1.bf16.msra.mxu0 %v3535_v45  ;;  %2051 = vmatprep.subr.bf16.mxu1 %v3546_v49  ;;  %v3695_v45 = vld [vmem:[#allocation5 + $0x80] ss:$8 sps:$4 sm:$0xff]   ;;  %v3607_v49 = vld [vmem:[#allocation2 + $0x54c] ss:$16 sps:$4 sm:$0xff]  }
  0xd3   :  { %1965 = vmatprep.subr.bf16.mxu0 %v3543_v47  ;;  %v3602_v47 = vld [vmem:[#allocation2 + $0x528] ss:$16 sps:$4 sm:$0xff]  }
  0xd5   :  { %2052 = vmatpush1.bf16.msra.mxu1 %v3544_v51  ;;  %v3703_v51 = vld [vmem:[#allocation5 + $0xa4] ss:$8 sps:$4 sm:$0xff]  }
  0xd6   :  { %1966 = vmatpush1.bf16.msra.mxu0 %v3541_v50  ;;  %2053 = vmatprep.subr.bf16.mxu1 %v3552_v53  ;;  %v3698_v50 = vld [vmem:[#allocation5 + $0x90] ss:$8 sps:$4 sm:$0xff]   ;;  %v3610_v53 = vld [vmem:[#allocation2 + $0x56c] ss:$16 sps:$4 sm:$0xff]  }
  0xd7   :  { %1967 = vmatprep.subr.bf16.mxu0 %v3549_v52  ;;  %v3605_v52 = vld [vmem:[#allocation2 + $0x548] ss:$16 sps:$4 sm:$0xff]  }
  0xd9   :  { %2054 = vmatpush1.bf16.msra.mxu1 %v3550_v56  ;;  %v3706_v56 = vld [vmem:[#allocation5 + $0xb4] ss:$8 sps:$4 sm:$0xff]  }
  0xda   :  { %1968 = vmatpush1.bf16.msra.mxu0 %v3547_v54  ;;  %2055 = vmatprep.subr.bf16.mxu1 %v3558_v59  ;;  %v3701_v54 = vld [vmem:[#allocation5 + $0xa0] ss:$8 sps:$4 sm:$0xff]   ;;  %v3613_v59 = vld [vmem:[#allocation2 + $0x58c] ss:$16 sps:$4 sm:$0xff]  }
  0xdb   :  { %1969 = vmatprep.subr.bf16.mxu0 %v3555_v57  ;;  %v3608_v57 = vld [vmem:[#allocation2 + $0x568] ss:$16 sps:$4 sm:$0xff]  }
  0xdd   :  { %2056 = vmatpush1.bf16.msra.mxu1 %v3556_v61  ;;  %v3709_v61 = vld [vmem:[#allocation5 + $0xc4] ss:$8 sps:$4 sm:$0xff]  }
  0xde   :  { %1970 = vmatpush1.bf16.msra.mxu0 %v3553_v60  ;;  %2057 = vmatprep.subr.bf16.mxu1 %v3564_v63  ;;  %v3704_v60 = vld [vmem:[#allocation5 + $0xb0] ss:$8 sps:$4 sm:$0xff]   ;;  %v3616_v63 = vld [vmem:[#allocation2 + $0x5ac] ss:$16 sps:$4 sm:$0xff]  }
  0xdf   :  { %1971 = vmatprep.subr.bf16.mxu0 %v3561_v62  ;;  %v3611_v62 = vld [vmem:[#allocation2 + $0x588] ss:$16 sps:$4 sm:$0xff]  }
  0xe1   :  { %2058 = vmatpush1.bf16.msra.mxu1 %v3562_v1  ;;  %v3712_v1 = vld [vmem:[#allocation5 + $0xd4] ss:$8 sps:$4 sm:$0xff]  }
  0xe2   :  { %1972 = vmatpush1.bf16.msra.mxu0 %v3559_v0  ;;  %2059 = vmatprep.subr.bf16.mxu1 %v3570_v3  ;;  %v3707_v0 = vld [vmem:[#allocation5 + $0xc0] ss:$8 sps:$4 sm:$0xff]   ;;  %v3619_v3 = vld [vmem:[#allocation2 + $0x5cc] ss:$16 sps:$4 sm:$0xff]  }
  0xe3   :  { %1973 = vmatprep.subr.bf16.mxu0 %v3567_v2  ;;  %v3614_v2 = vld [vmem:[#allocation2 + $0x5a8] ss:$16 sps:$4 sm:$0xff]  }
  0xe5   :  { %2060 = vmatpush1.bf16.msra.mxu1 %v3568_v21  ;;  %v3620_v21 = vld [vmem:[#allocation2 + $0x5e8] ss:$16 sps:$4 sm:$0xff]  }
  0xe6   :  { %1974 = vmatpush1.bf16.msra.mxu0 %v3565_v4  ;;  %2072 = vmatprep.subr.bf16.mxu1 %v3577_v6  ;;  %v3710_v4 = vld [vmem:[#allocation5 + $0xd0] ss:$8 sps:$4 sm:$0xff]   ;;  %v3625_v6 = vld [vmem:[#allocation2 + $0x60c] ss:$16 sps:$4 sm:$0xff]  }
  0xe7   :  { %2566 = vmatprep.subr.bf16.mxu0 %v3673_v10  ;;  %v3631_v10 = vld [vmem:[#allocation2 + $0x64c] ss:$16 sps:$4 sm:$0xff]  }
  0xe8   :  { %2062 = vmatmul.mubr.bf16.vlgmr.msra.gmra.mrb[4].mxu1 %v3971_v37  ;;  %v3677_v37 = vld [vmem:[#allocation5 + $0x20] ss:$8 sps:$4 sm:$0xff]  }
  0xe9   :  { %1976 = vmatmul.mubr.bf16.vlgmr.msra.gmra.mrb[0].mxu0 %v4050_v8  ;;  %2073 = vmatpush1.bf16.msra.mxu1 %v3575_v7  ;;  %v3623_v7 = vld [vmem:[#allocation2 + $0x608] ss:$16 sps:$4 sm:$0xff]  }
  0xea   :  { %2104 = vmatprep.mubr.bf16.mxu1 %v4003_v24  ;;  %2074 = vmatprep.subr.bf16.mxu1 %v3580_v11  ;;  %v3680_v24 = vld [vmem:[#allocation5 + $0x30] ss:$8 sps:$4 sm:$0xff]   ;;  %v3628_v11 = vld [vmem:[#allocation2 + $0x62c] ss:$16 sps:$4 sm:$0xff]  }
  0xeb   :  { %2567 = vmatpush1.bf16.msra.mxu0 %v3671_v9  ;;  %v3626_v9 = vld [vmem:[#allocation2 + $0x628] ss:$16 sps:$4 sm:$0xff]  }
  0xec   :  { %2568 = vmatprep.subr.bf16.mxu0 %v3676_v13  ;;  %v3634_v13 = vld [vmem:[#allocation2 + $0x66c] ss:$16 sps:$4 sm:$0xff]  }
  0xed   :  { %2075 = vmatpush1.bf16.msra.mxu1 %v3578_v12  ;;  %v3629_v12 = vld [vmem:[#allocation2 + $0x648] ss:$16 sps:$4 sm:$0xff]  }
  0xee   :  { %2076 = vmatprep.subr.bf16.mxu1 %v3583_v14  ;;  %v3632_v14 = vld [vmem:[#allocation2 + $0x668] ss:$16 sps:$4 sm:$0xff]  }
  0xef   :  { %2569 = vmatpush1.bf16.msra.mxu0 %v3674_v15  ;;  %v3637_v15 = vld [vmem:[#allocation2 + $0x68c] ss:$16 sps:$4 sm:$0xff]  }
  0xf0   :  { %2570 = vmatprep.subr.bf16.mxu0 %v3679_v16  ;;  %v3635_v16 = vld [vmem:[#allocation2 + $0x688] ss:$16 sps:$4 sm:$0xff]  }
  0xf1   :  { %2077 = vmatpush1.bf16.msra.mxu1 %v3581_v17  ;;  %v3640_v17 = vld [vmem:[#allocation2 + $0x6ac] ss:$16 sps:$4 sm:$0xff]  }
  0xf2   :  { %2078 = vmatprep.subr.bf16.mxu1 %v3586_v18  ;;  %v3643_v18 = vld [vmem:[#allocation2 + $0x6cc] ss:$16 sps:$4 sm:$0xff]  }
  0xf3   :  { %2571 = vmatpush1.bf16.msra.mxu0 %v3677_v37 }
  0xf4   :  { %2572 = vmatprep.subr.bf16.mxu0 %v3682_v22  ;;  %v3641_v22 = vld [vmem:[#allocation2 + $0x6c8] ss:$16 sps:$4 sm:$0xff]  }
  0xf5   :  { %2079 = vmatpush1.bf16.msra.mxu1 %v3584_v19  ;;  %v3715_v19 = vld [vmem:[#allocation5 + $0xe4] ss:$8 sps:$4 sm:$0xff]  }
  0xf6   :  { %2080 = vmatprep.subr.bf16.mxu1 %v3589_v55 }
  0xf7   :  { %2573 = vmatpush1.bf16.msra.mxu0 %v3680_v24  ;;  %v3713_v24 = vld [vmem:[#allocation5 + $0xe0] ss:$8 sps:$4 sm:$0xff]  }
  0xf8   :  { %2574 = vmatprep.subr.bf16.mxu0 %v3685_v23 }
  0xf9   :  { %2081 = vmatpush1.bf16.msra.mxu1 %v3587_v25  ;;  %v3646_v25 = vld [vmem:[#allocation2 + $0x6ec] ss:$16 sps:$4 sm:$0xff]  }
  0xfa   :  { %2082 = vmatprep.subr.bf16.mxu1 %v3592_v26  ;;  %v3718_v26 = vld [vmem:[#allocation5 + $0xf4] ss:$8 sps:$4 sm:$0xff]  }
  0xfb   :  { %2575 = vmatpush1.bf16.msra.mxu0 %v3683_v27  ;;  %v3644_v27 = vld [vmem:[#allocation2 + $0x6e8] ss:$16 sps:$4 sm:$0xff]  }
  0xfc   :  { %2576 = vmatprep.subr.bf16.mxu0 %v3688_v28  ;;  %v3716_v28 = vld [vmem:[#allocation5 + $0xf0] ss:$8 sps:$4 sm:$0xff]  }
  0xfd   :  { %2083 = vmatpush1.bf16.msra.mxu1 %v3590_v29  ;;  %v3649_v29 = vld [vmem:[#allocation2 + $0x70c] ss:$16 sps:$4 sm:$0xff]  }
  0xfe   :  { %2084 = vmatprep.subr.bf16.mxu1 %v3595_v30  ;;  %v3647_v30 = vld [vmem:[#allocation2 + $0x708] ss:$16 sps:$4 sm:$0xff]  }
  0xff   :  { %2577 = vmatpush1.bf16.msra.mxu0 %v3686_v31  ;;  %v3652_v31 = vld [vmem:[#allocation2 + $0x72c] ss:$16 sps:$4 sm:$0xff]  }
 0x100   :  { %2578 = vmatprep.subr.bf16.mxu0 %v3691_v32  ;;  %v3721_v32 = vld [vmem:[#allocation5 + $0x104] ss:$8 sps:$4 sm:$0xff]  }
 0x101   :  { %2085 = vmatpush1.bf16.msra.mxu1 %v3593_v33  ;;  %v3650_v33 = vld [vmem:[#allocation2 + $0x728] ss:$16 sps:$4 sm:$0xff]  }
 0x102   :  { %2086 = vmatprep.subr.bf16.mxu1 %v3598_v35  ;;  %v3655_v35 = vld [vmem:[#allocation2 + $0x74c] ss:$16 sps:$4 sm:$0xff]  }
 0x103   :  { %2579 = vmatpush1.bf16.msra.mxu0 %v3689_v36  ;;  %v3653_v36 = vld [vmem:[#allocation2 + $0x748] ss:$16 sps:$4 sm:$0xff]  }
 0x104   :  { %2580 = vmatprep.subr.bf16.mxu0 %v3694_v38  ;;  %v3658_v38 = vld [vmem:[#allocation2 + $0x76c] ss:$16 sps:$4 sm:$0xff]  }
 0x105   :  { %2087 = vmatpush1.bf16.msra.mxu1 %v3596_v39  ;;  %v3656_v39 = vld [vmem:[#allocation2 + $0x768] ss:$16 sps:$4 sm:$0xff]  }
 0x106   :  { %2088 = vmatprep.subr.bf16.mxu1 %v3601_v40  ;;  %v3661_v40 = vld [vmem:[#allocation2 + $0x78c] ss:$16 sps:$4 sm:$0xff]  }
 0x107   :  { %2581 = vmatpush1.bf16.msra.mxu0 %v3692_v41  ;;  %v3659_v41 = vld [vmem:[#allocation2 + $0x788] ss:$16 sps:$4 sm:$0xff]  }
 0x108   :  { %2582 = vmatprep.subr.bf16.mxu0 %v3697_v42  ;;  %v3664_v42 = vld [vmem:[#allocation2 + $0x7ac] ss:$16 sps:$4 sm:$0xff]  }
 0x109   :  { %2089 = vmatpush1.bf16.msra.mxu1 %v3599_v43  ;;  %v3662_v43 = vld [vmem:[#allocation2 + $0x7a8] ss:$16 sps:$4 sm:$0xff]  }
 0x10a   :  { %2090 = vmatprep.subr.bf16.mxu1 %v3604_v44  ;;  %v3667_v44 = vld [vmem:[#allocation2 + $0x7cc] ss:$16 sps:$4 sm:$0xff]  }
 0x10b   :  { %2583 = vmatpush1.bf16.msra.mxu0 %v3695_v45  ;;  %v3665_v45 = vld [vmem:[#allocation2 + $0x7c8] ss:$16 sps:$4 sm:$0xff]  }
 0x10c   :  { %2584 = vmatprep.subr.bf16.mxu0 %v3700_v46  ;;  %v3670_v46 = vld [vmem:[#allocation2 + $0x7ec] ss:$16 sps:$4 sm:$0xff]  }
 0x10d   :  { %2091 = vmatpush1.bf16.msra.mxu1 %v3602_v47  ;;  %v3668_v47 = vld [vmem:[#allocation2 + $0x7e8] ss:$16 sps:$4 sm:$0xff]  }
 0x10e   :  { %2092 = vmatprep.subr.bf16.mxu1 %v3607_v49  ;;  %v516_v49 = vsub.s32 0, %v3929_v48 }
 0x10f   :  { %2585 = vmatpush1.bf16.msra.mxu0 %v3698_v50  ;;  %v4062_v50 = vld [vmem:[%s4147_s2] sm:$0xf] }
 0x110   :  { %2586 = vmatprep.subr.bf16.mxu0 %v3703_v51  ;;  %v520_v51 = vsub.s32 1, %v3929_v48 }
 0x111   :  { %2093 = vmatpush1.bf16.msra.mxu1 %v3605_v52  ;;  %v517_v52 = vrot.slane %v4062_v50, %v516_v49 }
 0x112   :  { %2094 = vmatprep.subr.bf16.mxu1 %v3610_v53  ;;  %v521_v53 = vrot.slane %v4062_v50, %v520_v51 }
 0x113   :  { %2587 = vmatpush1.bf16.msra.mxu0 %v3701_v54 }
 0x114   :  { %2588 = vmatprep.subr.bf16.mxu0 %v3706_v56 }
 0x115   :  { %2095 = vmatpush1.bf16.msra.mxu1 %v3608_v57 }
 0x116   :  { %2096 = vmatprep.subr.bf16.mxu1 %v3613_v59 }
 0x117   :  { %2589 = vmatpush1.bf16.msra.mxu0 %v3704_v60 }
 0x118   :  { %2590 = vmatprep.subr.bf16.mxu0 %v3709_v61 }
 0x119   :  { %2097 = vmatpush1.bf16.msra.mxu1 %v3611_v62 }
 0x11a   :  { %2098 = vmatprep.subr.bf16.mxu1 %v3616_v63 }
 0x11b   :  { %2591 = vmatpush1.bf16.msra.mxu0 %v3707_v0 }
 0x11c   :  { %2592 = vmatprep.subr.bf16.mxu0 %v3712_v1 }
 0x11d   :  { %2099 = vmatpush1.bf16.msra.mxu1 %v3614_v2 }
 0x11e   :  { %2100 = vmatprep.subr.bf16.mxu1 %v3619_v3 }
 0x11f   :  { %2593 = vmatpush1.bf16.msra.mxu0 %v3710_v4 }
 0x120   :  { %2594 = vmatprep.subr.bf16.mxu0 %v3715_v19  ;;  %v3733_v19 = vld [vmem:[#allocation5 + $0x144] ss:$8 sps:$4 sm:$0xff]  }
 0x121   :  { %2101 = vmatpush1.bf16.msra.mxu1 %v3617_v34 }
 0x122   :  { %2102 = vmatprep.subr.bf16.mxu1 %v3622_v5 }
 0x123   :  { %2595 = vmatpush1.bf16.msra.mxu0 %v3713_v24  ;;  %v3731_v24 = vld [vmem:[#allocation5 + $0x140] ss:$8 sps:$4 sm:$0xff]  }
 0x124   :  { %2596 = vmatprep.subr.bf16.mxu0 %v3718_v26  ;;  %v3777_v26 = vld [vmem:[%s4150_s5 + $0x68] sm:$0xff]  }
 0x125   :  { %2103 = vmatpush1.bf16.msra.mxu1 %v3620_v21 }
 0x126   :  { %2115 = vmatprep.subr.bf16.mxu1 %v3625_v6 }
 0x127   :  { %2597 = vmatpush1.bf16.msra.mxu0 %v3716_v28  ;;  %v3739_v28 = vld [vmem:[#allocation5 + $0x164] ss:$8 sps:$4 sm:$0xff]  }
 0x128   :  { %2105 = vmatmul.mubr.bf16.vlgmr.msra.gmra.mrb[4].mxu1 %v4010_v58  ;;  %v3638_v58 = vld [vmem:[#allocation2 + $0x6a8] ss:$16 sps:$4 sm:$0xff]   ;;  %2609 = vmatprep.subr.bf16.mxu0 %v3721_v32  ;;  %v3745_v32 = vld [vmem:[#allocation5 + $0x184] ss:$8 sps:$4 sm:$0xff]  }
 0x129   :  { %2116 = vmatpush1.bf16.msra.mxu1 %v3623_v7  ;;  %2147 = vmatprep.mubr.bf16.mxu1 %v4043_v20  ;;  %v3719_v7 = vld [vmem:[#allocation5 + $0x100] ss:$8 sps:$4 sm:$0xff]  }
 0x12a   :  { %2117 = vmatprep.subr.bf16.mxu1 %v3628_v11  ;;  %v3724_v11 = vld [vmem:[#allocation5 + $0x114] ss:$8 sps:$4 sm:$0xff]  }
 0x12d   :  { %2118 = vmatpush1.bf16.msra.mxu1 %v3626_v9  ;;  %v3767_v9 = vld [vmem:[%s4150_s5 + $0x40] sm:$0xff]  }
 0x12e   :  { %2119 = vmatprep.subr.bf16.mxu1 %v3631_v10  ;;  %v3768_v10 = vld [vmem:[%s4150_s5] sm:$0xff]  }
 0x131   :  { %2120 = vmatpush1.bf16.msra.mxu1 %v3629_v12  ;;  %v3769_v12 = vld [vmem:[%s4150_s5 + $0x48] sm:$0xff]  }
 0x132   :  { %2121 = vmatprep.subr.bf16.mxu1 %v3634_v13  ;;  %v3722_v13 = vld [vmem:[#allocation5 + $0x110] ss:$8 sps:$4 sm:$0xff]  }
 0x135   :  { %2122 = vmatpush1.bf16.msra.mxu1 %v3632_v14  ;;  %v3727_v14 = vld [vmem:[#allocation5 + $0x124] ss:$8 sps:$4 sm:$0xff]  }
 0x136   :  { %2123 = vmatprep.subr.bf16.mxu1 %v3637_v15  ;;  %v3770_v15 = vld [vmem:[%s4150_s5 + $0x8] sm:$0xff]  }
 0x139   :  { %2124 = vmatpush1.bf16.msra.mxu1 %v3635_v16  ;;  %v3771_v16 = vld [vmem:[%s4150_s5 + $0x50] sm:$0xff]  }
 0x13a   :  { %2125 = vmatprep.subr.bf16.mxu1 %v3640_v17  ;;  %v3725_v17 = vld [vmem:[#allocation5 + $0x120] ss:$8 sps:$4 sm:$0xff]  }
 0x13b   :  { %v1848_v37 = vpop.f32.mrb[0].mxu1 }
 0x13c   :  { %v1850_v20 = vpop.f32.mrb[1].mxu1  ;;  %v1849_v54 = vadd.f32 %v1848_v37, %v517_v52  ;;  %v3773_v37 = vld [vmem:[%s4150_s5 + $0x58] sm:$0xff]  }
 0x13d   :  { %v1852_v55 = vpop.f32.mrb[2].mxu1  ;;  %2126 = vmatpush1.bf16.msra.mxu1 %v3638_v58  ;;  %v1851_v56 = vadd.f32 %v1850_v20, %v521_v53  ;;  %v3730_v58 = vld [vmem:[#allocation5 + $0x134] ss:$8 sps:$4 sm:$0xff]   ;;  %v3728_v20 = vld [vmem:[#allocation5 + $0x130] ss:$8 sps:$4 sm:$0xff]  }
 0x13e   :  { %v1854_v23 = vpop.f32.mrb[3].mxu1  ;;  %2127 = vmatprep.subr.bf16.mxu1 %v3643_v18  ;;  %v1853_v57 = vadd.f32 %v1852_v55, %v517_v52  ;;  %v3772_v18 = vld [vmem:[%s4150_s5 + $0x10] sm:$0xff]   ;;  %v3774_v55 = vld [vmem:[%s4150_s5 + $0x18] sm:$0xff]  }
 0x13f   :  { %v1855_v61 = vadd.f32 %v1854_v23, %v521_v53  ;;  %v3736_v23 = vld [vmem:[#allocation5 + $0x154] ss:$8 sps:$4 sm:$0xff]   ;;  %v3764_v53 = vld [vmem:[#allocation5 + $0x1f0] ss:$8 sps:$4 sm:$0xff]  }
 0x140   :  { %v3766_v52 = vld [vmem:[#allocation5 + $0x1f4] ss:$8 sps:$4 sm:$0xff]  }
 0x141   :  { %2128 = vmatpush1.bf16.msra.mxu1 %v3641_v22  ;;  %v3775_v22 = vld [vmem:[%s4150_s5 + $0x60] sm:$0xff]  }
 0x142   :  { %2129 = vmatprep.subr.bf16.mxu1 %v3646_v25  ;;  %v3776_v25 = vld [vmem:[%s4150_s5 + $0x20] sm:$0xff]  }
 0x145   :  { %2130 = vmatpush1.bf16.msra.mxu1 %v3644_v27  ;;  %v3734_v27 = vld [vmem:[#allocation5 + $0x150] ss:$8 sps:$4 sm:$0xff]  }
 0x146   :  { %2131 = vmatprep.subr.bf16.mxu1 %v3649_v29  ;;  %v3737_v29 = vld [vmem:[#allocation5 + $0x160] ss:$8 sps:$4 sm:$0xff]  }
 0x149   :  { %2132 = vmatpush1.bf16.msra.mxu1 %v3647_v30  ;;  %v3742_v30 = vld [vmem:[#allocation5 + $0x174] ss:$8 sps:$4 sm:$0xff]  }
 0x14a   :  { %2133 = vmatprep.subr.bf16.mxu1 %v3652_v31  ;;  %v3740_v31 = vld [vmem:[#allocation5 + $0x170] ss:$8 sps:$4 sm:$0xff]  }
 0x14d   :  { %2134 = vmatpush1.bf16.msra.mxu1 %v3650_v33  ;;  %v3743_v33 = vld [vmem:[#allocation5 + $0x180] ss:$8 sps:$4 sm:$0xff]  }
 0x14e   :  { %2135 = vmatprep.subr.bf16.mxu1 %v3655_v35  ;;  %v3748_v35 = vld [vmem:[#allocation5 + $0x194] ss:$8 sps:$4 sm:$0xff]  }
 0x151   :  { %2136 = vmatpush1.bf16.msra.mxu1 %v3653_v36  ;;  %v3746_v36 = vld [vmem:[#allocation5 + $0x190] ss:$8 sps:$4 sm:$0xff]  }
 0x152   :  { %2137 = vmatprep.subr.bf16.mxu1 %v3658_v38  ;;  %v3751_v38 = vld [vmem:[#allocation5 + $0x1a4] ss:$8 sps:$4 sm:$0xff]  }
 0x155   :  { %2138 = vmatpush1.bf16.msra.mxu1 %v3656_v39  ;;  %v3749_v39 = vld [vmem:[#allocation5 + $0x1a0] ss:$8 sps:$4 sm:$0xff]  }
 0x156   :  { %2139 = vmatprep.subr.bf16.mxu1 %v3661_v40  ;;  %v3754_v40 = vld [vmem:[#allocation5 + $0x1b4] ss:$8 sps:$4 sm:$0xff]  }
 0x159   :  { %2140 = vmatpush1.bf16.msra.mxu1 %v3659_v41  ;;  %v3752_v41 = vld [vmem:[#allocation5 + $0x1b0] ss:$8 sps:$4 sm:$0xff]  }
 0x15a   :  { %2141 = vmatprep.subr.bf16.mxu1 %v3664_v42  ;;  %v3757_v42 = vld [vmem:[#allocation5 + $0x1c4] ss:$8 sps:$4 sm:$0xff]  }
 0x15d   :  { %2142 = vmatpush1.bf16.msra.mxu1 %v3662_v43  ;;  %v3755_v43 = vld [vmem:[#allocation5 + $0x1c0] ss:$8 sps:$4 sm:$0xff]  }
 0x15e   :  { %2143 = vmatprep.subr.bf16.mxu1 %v3667_v44  ;;  %v3760_v44 = vld [vmem:[#allocation5 + $0x1d4] ss:$8 sps:$4 sm:$0xff]  }
 0x161   :  { %2144 = vmatpush1.bf16.msra.mxu1 %v3665_v45  ;;  %v3758_v45 = vld [vmem:[#allocation5 + $0x1d0] ss:$8 sps:$4 sm:$0xff]  }
 0x162   :  { %2145 = vmatprep.subr.bf16.mxu1 %v3670_v46  ;;  %v3763_v46 = vld [vmem:[#allocation5 + $0x1e4] ss:$8 sps:$4 sm:$0xff]  }
 0x165   :  { %2146 = vmatpush1.bf16.msra.mxu1 %v3668_v47  ;;  %v3761_v47 = vld [vmem:[#allocation5 + $0x1e0] ss:$8 sps:$4 sm:$0xff]  }
 0x166   :  { %3191 = vmatprep.subr.bf16.mxu1 %v3767_v9  ;;  %v3781_v9 = vld [vmem:[%s4150_s5 + $0x78] sm:$0xff]  }
 0x168   :  { %2148 = vmatmul.mubr.bf16.vlgmr.msra.gmra.mrb[4].mxu1 %v4050_v8 }
 0x169   :  { %3192 = vmatpush3.bf16.msra.mxu1 %v3768_v10  ;;  %v3782_v10 = vld [vmem:[%s4150_s5 + $0x38] sm:$0xff]  }
 0x16a   :  { %3193 = vmatprep.subr.bf16.mxu1 %v3769_v12  ;;  %v2234_v12 = vld [vmem:[%s4149_s4] sm:$0x3] }
 0x16d   :  { %3194 = vmatpush3.bf16.msra.mxu1 %v3770_v15 }
 0x16e   :  { %3195 = vmatprep.subr.bf16.mxu1 %v3771_v16 }
 0x171   :  { %3196 = vmatpush3.bf16.msra.mxu1 %v3772_v18 }
 0x172   :  { %3197 = vmatprep.subr.bf16.mxu1 %v3773_v37 }
 0x175   :  { %3198 = vmatpush3.bf16.msra.mxu1 %v3774_v55 }
 0x176   :  { %3199 = vmatprep.subr.bf16.mxu1 %v3775_v22 }
 0x179   :  { %3200 = vmatpush3.bf16.msra.mxu1 %v3776_v25 }
 0x17a   :  { %3201 = vmatprep.subr.bf16.mxu1 %v3777_v26 }
 0x1bc   :  { %v1977_v8 = vpop.f32.mrb[0].mxu0 }
 0x1bd   :  { %v3214_v59 = vadd.f32 %v1977_v8, %v1849_v54  ;;  %v1979_v60 = vpop.f32.mrb[1].mxu0  ;;  %v524_v54 = vsub.s32 2, %v3929_v48 }
 0x1be   :  { %v3216_v62 = vadd.f32 %v1979_v60, %v1851_v56  ;;  %v1981_v63 = vpop.f32.mrb[2].mxu0  ;;  %v528_v56 = vsub.s32 3, %v3929_v48  ;;  %v3174_v48 = vld [vmem:[%s4151_s6] ss:$0 sm:$0xff] }
 0x1bf   :  { %v3218_v0 = vadd.f32 %v1981_v63, %v1853_v57  ;;  %v1983_v1 = vpop.f32.mrb[3].mxu0  ;;  %v2158_v3 = vmax.f32 %v3214_v59, 0.0  ;;  %v525_v8 = vrot.slane %v4062_v50, %v524_v54 }
 0x1c0   :  { %v3220_v2 = vadd.f32 %v1983_v1, %v1855_v61  ;;  %v2159_v34 = vmax.f32 %v3216_v62, 0.0  ;;  %v529_v57 = vrot.slane %v4062_v50, %v528_v56  ;;  %v3778_v50 = vld [vmem:[%s4150_s5 + $0x28] sm:$0xff]  }
 0x1c1   :  { %v2162_v4 = vmax.f32 %v3218_v0, 0.0  ;;  %3202 = vmatpush3.bf16.msra.mxu1 %v3778_v50 }
 0x1c2   :  { %v2163_v5 = vmax.f32 %v3220_v2, 0.0 }
 0x1c3   :  { %v2166_v21 = vpack.c.bf16 %v2162_v4, %v2158_v3 }
 0x1c4   :  { %v2167_v6 = vpack.c.bf16 %v2163_v5, %v2159_v34 }
 0x1c6   :  { %2598 = vmatprep.mubr.bf16.mxu0 %v2167_v6 }
 0x1c7   :  { %2599 = vmatmul.mubr.bf16.vlgmr.msra.gmra.mrb[4].mxu0 %v2166_v21 }
 0x1c8   :  { %2610 = vmatpush1.bf16.msra.mxu0 %v3719_v7  ;;  %v3779_v7 = vld [vmem:[%s4150_s5 + $0x70] sm:$0xff]  }
 0x1c9   :  { %2611 = vmatprep.subr.bf16.mxu0 %v3724_v11  ;;  %v3780_v11 = vld [vmem:[%s4150_s5 + $0x30] sm:$0xff]   ;;  %3203 = vmatprep.subr.bf16.mxu1 %v3779_v7 }
 0x1ca   :  { %3204 = vmatpush3.bf16.msra.mxu1 %v3780_v11 }
 0x1cb   :  { %3205 = vmatprep.subr.bf16.mxu1 %v3781_v9 }
 0x1cc   :  { %2612 = vmatpush1.bf16.msra.mxu0 %v3722_v13  ;;  %v2239_v13 = vrot.slane %v2234_v12, %v516_v49 }
 0x1cd   :  { %2613 = vmatprep.subr.bf16.mxu0 %v3727_v14  ;;  %v2243_v14 = vrot.slane %v2234_v12, %v520_v51 }
 0x1ce   :  { %3206 = vmatpush3.bf16.msra.mxu1 %v3782_v10 }
 0x1d0   :  { %2614 = vmatpush1.bf16.msra.mxu0 %v3725_v17 }
 0x1d1   :  { %2615 = vmatprep.subr.bf16.mxu0 %v3730_v58 }
 0x1d4   :  { %2616 = vmatpush1.bf16.msra.mxu0 %v3728_v20 }
 0x1d5   :  { %2617 = vmatprep.subr.bf16.mxu0 %v3733_v19 }
 0x1d8   :  { %2618 = vmatpush1.bf16.msra.mxu0 %v3731_v24 }
 0x1d9   :  { %2619 = vmatprep.subr.bf16.mxu0 %v3736_v23 }
 0x1dc   :  { %2620 = vmatpush1.bf16.msra.mxu0 %v3734_v27 }
 0x1dd   :  { %2621 = vmatprep.subr.bf16.mxu0 %v3739_v28 }
 0x1e0   :  { %2622 = vmatpush1.bf16.msra.mxu0 %v3737_v29 }
 0x1e1   :  { %2623 = vmatprep.subr.bf16.mxu0 %v3742_v30 }
 0x1e4   :  { %2624 = vmatpush1.bf16.msra.mxu0 %v3740_v31 }
 0x1e5   :  { %2625 = vmatprep.subr.bf16.mxu0 %v3745_v32 }
 0x1e8   :  { %2626 = vmatpush1.bf16.msra.mxu0 %v3743_v33 }
 0x1e9   :  { %2627 = vmatprep.subr.bf16.mxu0 %v3748_v35 }
 0x1ec   :  { %2628 = vmatpush1.bf16.msra.mxu0 %v3746_v36 }
 0x1ed   :  { %2629 = vmatprep.subr.bf16.mxu0 %v3751_v38 }
 0x1f0   :  { %2630 = vmatpush1.bf16.msra.mxu0 %v3749_v39 }
 0x1f1   :  { %2631 = vmatprep.subr.bf16.mxu0 %v3754_v40 }
 0x1f4   :  { %2632 = vmatpush1.bf16.msra.mxu0 %v3752_v41 }
 0x1f5   :  { %2633 = vmatprep.subr.bf16.mxu0 %v3757_v42 }
 0x1f8   :  { %2634 = vmatpush1.bf16.msra.mxu0 %v3755_v43 }
 0x1f9   :  { %2635 = vmatprep.subr.bf16.mxu0 %v3760_v44 }
 0x1fc   :  { %2636 = vmatpush1.bf16.msra.mxu0 %v3758_v45 }
 0x1fd   :  { %2637 = vmatprep.subr.bf16.mxu0 %v3763_v46 }
 0x200   :  { %2638 = vmatpush1.bf16.msra.mxu0 %v3761_v47 }
 0x201   :  { %2639 = vmatprep.subr.bf16.mxu0 %v3766_v52 }
 0x204   :  { %2640 = vmatpush1.bf16.msra.mxu0 %v3764_v53 }
 0x23b   :  { %v2149_v59 = vpop.f32.mrb[4].mxu1 }
 0x23c   :  { %v3221_v60 = vadd.f32 %v2149_v59, %v525_v8  ;;  %v2151_v61 = vpop.f32.mrb[5].mxu1 }
 0x23d   :  { %v3222_v62 = vadd.f32 %v2151_v61, %v529_v57  ;;  %v2153_v63 = vpop.f32.mrb[6].mxu1 }
 0x23e   :  { %v3223_v0 = vadd.f32 %v2153_v63, %v525_v8  ;;  %v2155_v1 = vpop.f32.mrb[7].mxu1  ;;  %v2160_v3 = vmax.f32 %v3221_v60, 0.0 }
 0x23f   :  { %v3224_v2 = vadd.f32 %v2155_v1, %v529_v57  ;;  %v2161_v34 = vmax.f32 %v3222_v62, 0.0 }
 0x240   :  { %v2164_v4 = vmax.f32 %v3223_v0, 0.0 }
 0x241   :  { %v2165_v5 = vmax.f32 %v3224_v2, 0.0 }
 0x242   :  { %v2168_v21 = vpack.c.bf16 %v2164_v4, %v2160_v3 }
 0x243   :  { %v2169_v6 = vpack.c.bf16 %v2165_v5, %v2161_v34 }
 0x245   :  { %2641 = vmatprep.mubr.bf16.mxu0 %v2169_v6 }
 0x246   :  { %2642 = vmatmul.mubr.bf16.vlgmr.msra.gmra.mrb[4].mxu0 %v2168_v21 }
 0x319   :  { %v2643_v15 = vpop.f32.mrb[4].mxu0 }
 0x31a   :  { %v3225_v16 = vadd.f32 %v2643_v15, %v2239_v13  ;;  %v2645_v17 = vpop.f32.mrb[5].mxu0 }
 0x31b   :  { %v3226_v58 = vadd.f32 %v2645_v17, %v2243_v14  ;;  %v2647_v18 = vpop.f32.mrb[6].mxu0 }
 0x31c   :  { %v3227_v37 = vadd.f32 %v2647_v18, %v2239_v13  ;;  %v2649_v20 = vpop.f32.mrb[7].mxu0  ;;  %v2652_v55 = vmax.f32 %v3225_v16, 0.0 }
 0x31d   :  { %v3228_v19 = vadd.f32 %v2649_v20, %v2243_v14  ;;  %v2653_v24 = vmax.f32 %v3226_v58, 0.0 }
 0x31e   :  { %v2654_v22 = vmax.f32 %v3227_v37, 0.0 }
 0x31f   :  { %v2655_v23 = vmax.f32 %v3228_v19, 0.0 }
 0x320   :  { %v2656_v25 = vpack.c.bf16 %v2654_v22, %v2652_v55 }
 0x321   :  { %v2657_v26 = vpack.c.bf16 %v2655_v23, %v2653_v24 }
 0x323   :  { %2825 = vmatprep.mubr.bf16.mxu1 %v2657_v26 }
 0x324   :  { %2826 = vmatmul.mubr.bf16.vlgmr.msra.gmra.mrb[8].mxu1 %v2656_v25 }
 0x3f7   :  { %v3207_v49 = vpop.f32.mrb[8].mxu1 }
 0x3f8   :  { %v3208_v51 = vpop.f32.mrb[9].mxu1 }
 0x3f9   :  { %v3209_v27 = vadd.f32 %v3208_v51, %v3207_v49  ;;  %v3210_v28 = vpop.f32.mrb[10].mxu1 }
 0x3fa   :  { %v3211_v29 = vpop.f32.mrb[11].mxu1 }
 0x3fb   :  { %v2828_v30 = vadd.f32 %v3209_v27, %v3174_v48  ;;  %v3212_v31 = vadd.f32 %v3211_v29, %v3210_v28 }
 0x3fd   :  { %2834 = vst [vmem:[#allocation7] sm:$0xff] %v2828_v30  ;;  %v2831_v32 = vadd.f32 %v3212_v31, %v3174_v48 }
 0x3ff   :  { %2835 = vst [vmem:[#allocation7 + $0x8] sm:$0xff] %v2831_v32 }
 0x400   :  { %2840 = vsyncadd [#allocation4], 224  ;;  %s3862_s18 = smov [#allocation7]  }
 0x401   :  { %s2841_s19 = sshll.u32 %s3862_s18, 4  ;;  %s2842_s19 = int_to_ptr.vmem [resolvable:$true] %s2841_s19 }
 0x402   :  { %s3827_s20 = scalar_lea.vmem %s2842_s19, 32  ;;  %s3831_s21 = scalar_lea.vmem %s2842_s19, 256 }
 0x403   :  { %p3828_p2 = scmp.ne.s32.totalorder %s2842_s19, %s3827_s20  ;;  %p3832_p3 = scmp.lt.s32.totalorder %s2842_s19, %s2842_s19 }
 0x404   :  { %p3833_p4 = scmp.lt.s32.totalorder %s3831_s21, %s3827_s20 }
 0x406   :  { %p3834_p5 = por %p3833_p4, %p3832_p3 }
 0x408   :  { %p3835_p6 = pnand %p3834_p5, %p3828_p2 }
 0x40a   :  { %3838 = shalt.err (!%p3835_p6)
}
 0x40b   :  { %s3839_s23 = scalar_lea.hbm %s4152_s7, 32 }
 0x40c   :  { %p3840_p7 = scmp.ne.s32.totalorder %s4152_s7, %s3839_s23  ;;  %p3843_p8 = scmp.lt.u32.totalorder %s3839_s23, %s4152_s7 }
 0x40e   :  { %p3845_p9 = pnand %p3843_p8, %p3840_p7 }
 0x410   :  { %3848 = shalt.err (!%p3845_p9)
}
 0x411   :  { %s3863_s27 = smov 32   ;;  %s3864_s3 = smov 2  }
 0x412   :  { %2847 = dma.vmem_to_hbm [thread:$0]  %s2842_s19, 32, %s4152_s7, [#allocation4], %s3863_s27, %s3863_s27, %s3864_s3  }
 0x413   :  { %3853 = dma.done.wait [#allocation4], 256  }
 0x414   :  { %3854 = vsyncadd [#allocation4], 4294967040 }
 0x415   :  { %2851 = vsyncpa [#allocation3], 1 }
 0x416   :  { %2852 = vsyncpa [#allocation6], 1 }
 0x417   :  { %2853 = vsyncpa [#allocation4], 1 }

</bundles_post_ra>
